<compile_context>
chip_gen: v7x
topology: tpu7x:2x2x1
jax: 0.10.0
libtpu: 0.0.40
codegen_flags: <defaults>
</compile_context>

<pallas_src>
import functools

import jax
import jax.numpy as jnp
from jax.experimental import pallas as pl
from jax.experimental.pallas import tpu as pltpu

LANE = 128


def _round_up(n, m):
    return ((n + m - 1) // m) * m


def net_ver2_kernel(x_ref, w1_ref, b1_ref, w2_ref, w3_ref, b3_ref, o_ref):
    """One batch tile: fc1 + bias + ReLU -> fc2 (no bias) + ReLU -> out + bias.

    Weights / matmul operands are bf16 (MXU bf16 path, half the DMA bytes);
    accumulations and all elementwise work are f32.
    """
    w_dtype = w1_ref.dtype
    # fc1 + bias + ReLU
    h1 = jnp.dot(x_ref[...], w1_ref[...], preferred_element_type=jnp.float32)
    h1 = jnp.maximum(h1 + b1_ref[...], 0.0)
    # fc2 (no bias) + ReLU
    h2 = jnp.dot(h1.astype(w_dtype), w2_ref[...],
                 preferred_element_type=jnp.float32)
    h2 = jnp.maximum(h2, 0.0)
    # out layer
    o_ref[...] = (
        jnp.dot(h2.astype(w_dtype), w3_ref[...],
                preferred_element_type=jnp.float32)
        + b3_ref[...]
    ).astype(o_ref.dtype)


def net_ver2_forward(x, padded_params, *, n_actions, batch_tile=256):
    """x: [B, N_STATES] float32. padded_params: output of pad_params()."""
    w1 = padded_params["w1"]
    b1 = padded_params["b1"]
    w2 = padded_params["w2"]
    w3 = padded_params["w3"]
    b3 = padded_params["b3"]

    B, n_states = x.shape
    f_in, h1 = w1.shape
    h2, f_out = w3.shape

    tb = batch_tile
    b_pad = _round_up(max(B, 1), tb)

    # Zero-pad batch and feature dims; cast activations to the weight dtype so
    # both MXU operands take the bf16 path (accumulation stays f32 in-kernel).
    x_p = jnp.zeros((b_pad, f_in), w1.dtype).at[:B, :n_states].set(
        x.astype(w1.dtype))

    flops = 2 * b_pad * (f_in * h1 + h1 * h2 + h2 * f_out)
    bytes_accessed = int(
        x_p.size * x_p.dtype.itemsize
        + sum(int(a.size * a.dtype.itemsize) for a in (w1, b1, w2, w3, b3))
        + b_pad * f_out * 4
    )

    out = pl.pallas_call(
        net_ver2_kernel,
        out_shape=jax.ShapeDtypeStruct((b_pad, f_out), jnp.float32),
        grid_spec=pltpu.PrefetchScalarGridSpec(
            num_scalar_prefetch=0,
            grid=(b_pad // tb,),
            in_specs=[
                pl.BlockSpec((tb, f_in), lambda i: (i, 0)),    # x: tiled on batch
                pl.BlockSpec((f_in, h1), lambda i: (0, 0)),    # w1: VMEM-resident
                pl.BlockSpec((1, h1), lambda i: (0, 0)),       # b1
                pl.BlockSpec((h1, h2), lambda i: (0, 0)),      # w2
                pl.BlockSpec((h2, f_out), lambda i: (0, 0)),   # w3
                pl.BlockSpec((1, f_out), lambda i: (0, 0)),    # b3
            ],
            out_specs=pl.BlockSpec((tb, f_out), lambda i: (i, 0)),
        ),
        compiler_params=pltpu.CompilerParams(
            # Batch tiles are independent -> shard across TensorCores on v7x.
            dimension_semantics=("parallel",),
        ),
        cost_estimate=pl.CostEstimate(
            flops=flops, transcendentals=0, bytes_accessed=bytes_accessed),
    )(x_p, w1, b1, w2, w3, b3)

    # Slice back to the logical shape (padding rows/cols are discarded).
    return out[:B, :n_actions]


def init_params(key, n_states, n_actions):
    """Logical (unpadded) params mirroring Net_ver2.__init__.

    PyTorch stores Linear weights as [out, in]; we store the transpose
    [in, out] so the kernel does a plain right-multiply. Weights ~ N(0, 0.1),
    biases ~ U(-1/sqrt(fan_in), 1/sqrt(fan_in)) (PyTorch default bias init).
    """
    k1, k2, k3, kb1, kb3 = jax.random.split(key, 5)
    w1 = 0.1 * jax.random.normal(k1, (n_states, 400), dtype=jnp.float32)
    w2 = 0.1 * jax.random.normal(k2, (400, 20), dtype=jnp.float32)
    w3 = 0.1 * jax.random.normal(k3, (20, n_actions), dtype=jnp.float32)
    bound1 = float(n_states) ** -0.5
    bound3 = 20.0 ** -0.5
    b1 = jax.random.uniform(kb1, (400,), jnp.float32, -bound1, bound1)
    b3 = jax.random.uniform(kb3, (n_actions,), jnp.float32, -bound3, bound3)
    return {"w1": w1, "b1": b1, "w2": w2, "w3": w3, "b3": b3}


def pad_params(params, weight_dtype=jnp.bfloat16):
    """Zero-pad every feature dim to a multiple of 128; weights -> bf16,
    biases stay f32 as [1, padded] rows."""
    w1, b1, w2, w3, b3 = (params[k] for k in ("w1", "b1", "w2", "w3", "b3"))
    n_states, h1 = w1.shape
    h2 = w2.shape[1]
    n_actions = w3.shape[1]
    f_in = _round_up(n_states, LANE)
    h1p = _round_up(h1, LANE)
    h2p = _round_up(h2, LANE)
    f_out = _round_up(n_actions, LANE)

    def pad2(a, rows, cols, dtype):
        out = jnp.zeros((rows, cols), dtype)
        return out.at[: a.shape[0], : a.shape[1]].set(a.astype(dtype))

    return {
        "w1": pad2(w1, f_in, h1p, weight_dtype),
        "b1": pad2(b1[None, :], 1, h1p, jnp.float32),
        "w2": pad2(w2, h1p, h2p, weight_dtype),
        "w3": pad2(w3, h2p, f_out, weight_dtype),
        "b3": pad2(b3[None, :], 1, f_out, jnp.float32),
    }


def reference_forward(x, params, weight_dtype=jnp.bfloat16):
    """Pure-JAX reference mirroring the kernel's mixed precision
    (bf16 matmul operands, f32 accumulation and elementwise)."""
    cast = lambda a: a.astype(weight_dtype).astype(jnp.float32)
    h1 = jnp.maximum(
        jnp.dot(cast(x), cast(params["w1"]),
                preferred_element_type=jnp.float32) + params["b1"], 0.0)
    h2 = jnp.maximum(
        jnp.dot(cast(h1), cast(params["w2"]),
                preferred_element_type=jnp.float32), 0.0)
    return (jnp.dot(cast(h2), cast(params["w3"]),
                    preferred_element_type=jnp.float32) + params["b3"])


if __name__ == "__main__":
    N_STATES = 16
    N_ACTIONS = 8
    BATCH = 2

    key = jax.random.PRNGKey(0)
    kx, kp = jax.random.split(key)
    x = jax.random.normal(kx, (BATCH, N_STATES), dtype=jnp.float32)

    params = init_params(kp, N_STATES, N_ACTIONS)
    padded = pad_params(params, weight_dtype=jnp.bfloat16)

    fwd = jax.jit(functools.partial(net_ver2_forward, n_actions=N_ACTIONS))
    out = jax.block_until_ready(fwd(x, padded))

    ref = reference_forward(x, params, weight_dtype=jnp.bfloat16)
    assert out.shape == (BATCH, N_ACTIONS), out.shape
    max_diff = float(jnp.max(jnp.abs(out - ref)))
    assert jnp.allclose(out, ref, atol=1e-3, rtol=1e-3), (
        f"mismatch vs reference, max |diff| = {max_diff}")

    print("KERNEL_OK")
</pallas_src>

<mosaic_0001>
module attributes {stable_mosaic.version = 11 : i64} {
  func.func @net_ver2_kernel(%arg0: i32, %arg1: memref<256x128xbf16, #tpu.memory_space<vmem>>, %arg2: memref<128x512xbf16, #tpu.memory_space<vmem>>, %arg3: memref<1x512xf32, #tpu.memory_space<vmem>>, %arg4: memref<512x128xbf16, #tpu.memory_space<vmem>>, %arg5: memref<128x128xbf16, #tpu.memory_space<vmem>>, %arg6: memref<1x128xf32, #tpu.memory_space<vmem>>, %arg7: memref<256x128xf32, #tpu.memory_space<vmem>>) attributes {dimension_semantics = [#tpu.dimension_semantics<parallel>], iteration_bounds = array<i64: 1>, scalar_prefetch = 0 : i64, scratch_operands = 0 : i64, tpu.core_type = #tpu.core_type<tc>, window_params = [{transform_indices = @transform_0, window_bounds = array<i64: 256, 128>}, {pipeline_mode = #tpu.pipeline_mode<synchronous>, transform_indices = @transform_1, window_bounds = array<i64: 128, 512>}, {pipeline_mode = #tpu.pipeline_mode<synchronous>, transform_indices = @transform_2, window_bounds = array<i64: 1, 512>}, {pipeline_mode = #tpu.pipeline_mode<synchronous>, transform_indices = @transform_3, window_bounds = array<i64: 512, 128>}, {pipeline_mode = #tpu.pipeline_mode<synchronous>, transform_indices = @transform_4, window_bounds = array<i64: 128, 128>}, {pipeline_mode = #tpu.pipeline_mode<synchronous>, transform_indices = @transform_5, window_bounds = array<i64: 1, 128>}, {transform_indices = @transform_6, window_bounds = array<i64: 256, 128>}]} {
    %c0 = arith.constant 0 : index
    %c0_0 = arith.constant 0 : index
    %0 = vector.load %arg1[%c0, %c0_0] : memref<256x128xbf16, #tpu.memory_space<vmem>>, vector<256x128xbf16>
    %c0_1 = arith.constant 0 : index
    %c0_2 = arith.constant 0 : index
    %1 = vector.load %arg2[%c0_1, %c0_2] : memref<128x512xbf16, #tpu.memory_space<vmem>>, vector<128x512xbf16>
    %cst = arith.constant dense<0.000000e+00> : vector<256x512xf32>
    %2 = tpu.matmul %0, %1, %cst {dimension_numbers = #tpu.dot_dimension_numbers<[1], [0], [0], [1], [0, 0, 1, 1], [], []>} : vector<256x128xbf16>, vector<128x512xbf16>, vector<256x512xf32> -> vector<256x512xf32>
    %c0_3 = arith.constant 0 : index
    %c0_4 = arith.constant 0 : index
    %3 = vector.load %arg3[%c0_3, %c0_4] : memref<1x512xf32, #tpu.memory_space<vmem>>, vector<1x512xf32>
    %4 = vector.broadcast %3 : vector<1x512xf32> to vector<256x512xf32>
    %5 = arith.addf %2, %4 : vector<256x512xf32>
    %cst_5 = arith.constant 0.000000e+00 : f32
    %6 = vector.broadcast %cst_5 : f32 to vector<256x512xf32>
    %7 = arith.maximumf %5, %6 : vector<256x512xf32>
    %8 = arith.truncf %7 : vector<256x512xf32> to vector<256x512xbf16>
    %c0_6 = arith.constant 0 : index
    %c0_7 = arith.constant 0 : index
    %9 = vector.load %arg4[%c0_6, %c0_7] : memref<512x128xbf16, #tpu.memory_space<vmem>>, vector<512x128xbf16>
    %cst_8 = arith.constant dense<0.000000e+00> : vector<256x128xf32>
    %10 = tpu.matmul %8, %9, %cst_8 {dimension_numbers = #tpu.dot_dimension_numbers<[1], [0], [0], [1], [0, 0, 1, 1], [], []>} : vector<256x512xbf16>, vector<512x128xbf16>, vector<256x128xf32> -> vector<256x128xf32>
    %cst_9 = arith.constant 0.000000e+00 : f32
    %11 = vector.broadcast %cst_9 : f32 to vector<256x128xf32>
    %12 = arith.maximumf %10, %11 : vector<256x128xf32>
    %13 = arith.truncf %12 : vector<256x128xf32> to vector<256x128xbf16>
    %c0_10 = arith.constant 0 : index
    %c0_11 = arith.constant 0 : index
    %14 = vector.load %arg5[%c0_10, %c0_11] : memref<128x128xbf16, #tpu.memory_space<vmem>>, vector<128x128xbf16>
    %cst_12 = arith.constant dense<0.000000e+00> : vector<256x128xf32>
    %15 = tpu.matmul %13, %14, %cst_12 {dimension_numbers = #tpu.dot_dimension_numbers<[1], [0], [0], [1], [0, 0, 1, 1], [], []>} : vector<256x128xbf16>, vector<128x128xbf16>, vector<256x128xf32> -> vector<256x128xf32>
    %c0_13 = arith.constant 0 : index
    %c0_14 = arith.constant 0 : index
    %16 = vector.load %arg6[%c0_13, %c0_14] : memref<1x128xf32, #tpu.memory_space<vmem>>, vector<1x128xf32>
    %17 = vector.broadcast %16 : vector<1x128xf32> to vector<256x128xf32>
    %18 = arith.addf %15, %17 : vector<256x128xf32>
    %c0_15 = arith.constant 0 : index
    %c0_16 = arith.constant 0 : index
    %19 = vector.load %arg7[%c0_15, %c0_16] : memref<256x128xf32, #tpu.memory_space<vmem>>, vector<256x128xf32>
    tpu.vector_store %arg7[%c0_15, %c0_16], %18 {strides = array<i32>} : memref<256x128xf32, #tpu.memory_space<vmem>>, vector<256x128xf32>,
    return
  }
  func.func @transform_0(%arg0: i32) -> (i32, i32) {
    %c0_i32 = arith.constant 0 : i32
    %c0_i32_0 = arith.constant 0 : i32
    return %arg0, %c0_i32 : i32, i32
  }
  func.func @transform_1(%arg0: i32) -> (i32, i32) {
    %c0_i32 = arith.constant 0 : i32
    %c0_i32_0 = arith.constant 0 : i32
    %c0_i32_1 = arith.constant 0 : i32
    return %c0_i32, %c0_i32_0 : i32, i32
  }
  func.func @transform_2(%arg0: i32) -> (i32, i32) {
    %c0_i32 = arith.constant 0 : i32
    %c0_i32_0 = arith.constant 0 : i32
    %c0_i32_1 = arith.constant 0 : i32
    return %c0_i32, %c0_i32_0 : i32, i32
  }
  func.func @transform_3(%arg0: i32) -> (i32, i32) {
    %c0_i32 = arith.constant 0 : i32
    %c0_i32_0 = arith.constant 0 : i32
    %c0_i32_1 = arith.constant 0 : i32
    return %c0_i32, %c0_i32_0 : i32, i32
  }
  func.func @transform_4(%arg0: i32) -> (i32, i32) {
    %c0_i32 = arith.constant 0 : i32
    %c0_i32_0 = arith.constant 0 : i32
    %c0_i32_1 = arith.constant 0 : i32
    return %c0_i32, %c0_i32_0 : i32, i32
  }
  func.func @transform_5(%arg0: i32) -> (i32, i32) {
    %c0_i32 = arith.constant 0 : i32
    %c0_i32_0 = arith.constant 0 : i32
    %c0_i32_1 = arith.constant 0 : i32
    return %c0_i32, %c0_i32_0 : i32, i32
  }
  func.func @transform_6(%arg0: i32) -> (i32, i32) {
    %c0_i32 = arith.constant 0 : i32
    %c0_i32_0 = arith.constant 0 : i32
    return %arg0, %c0_i32 : i32, i32
  }
}

</mosaic_0001>

<bundles_post_ra>
// kernel: net_ver2_forward.1
= control target key start
LH: loop header
LB: loop body
LE: loop exit
PB: predicated region body
PF: predicated region fallthrough
CT: control target
= control target key end

     0   :  { %11 = vsyncpa [#allocation3], 0  ;;  %s3008_s0 = inlined_call_operand.vmem [shape: bf16[256,128], index: 0, kind: input, shape index: {}]   ;;  %s3009_s1 = inlined_call_operand.hbm [shape: bf16[128,512], index: 1, kind: input, shape index: {}]   ;;  %s3010_s2 = inlined_call_operand.vmem [shape: f32[1,512], index: 2, kind: input, shape index: {}]   ;;  %s3011_s3 = inlined_call_operand.hbm [shape: bf16[512,128], index: 3, kind: input, shape index: {}]   ;;  %s3012_s4 = inlined_call_operand.vmem [shape: bf16[128,128], index: 4, kind: input, shape index: {}]   ;;  %s3013_s5 = inlined_call_operand.vmem [shape: f32[1,128], index: 5, kind: input, shape index: {}]   ;;  %s3014_s6 = inlined_call_operand.vmem [shape: f32[256,128], index: 6, kind: output, shape index: {}]  }
   0x1   :  { %12 = vsyncpa [#allocation5], 0  ;;  %s2428_s21 = smov [#allocation2]   ;;  %s2380_s25 = scalar_lea.hbm %s3009_s1, 4096 }
   0x2   :  { %s20_s22 = sshll.u32 %s2428_s21, 4  ;;  %p2381_p0 = scmp.ne.s32.totalorder %s3009_s1, %s2380_s25  ;;  %s21_s22 = int_to_ptr.vmem [resolvable:$true] %s20_s22 }
   0x3   :  { %p2384_p1 = scmp.lt.u32.totalorder %s2380_s25, %s3009_s1 }
   0x5   :  { %p2386_p2 = pnand %p2384_p1, %p2381_p0 }
   0x7   :  { %2389 = shalt.err (!%p2386_p2)
}
   0x8   :  { %s2390_s30 = scalar_lea.vmem %s21_s22, 4096  ;;  %p2395_p4 = scmp.lt.s32.totalorder %s21_s22, %s21_s22 }
   0x9   :  { %p2391_p3 = scmp.ne.s32.totalorder %s21_s22, %s2390_s30  ;;  %p2396_p5 = scmp.lt.s32.totalorder %s2390_s30, %s2390_s30 }
   0xb   :  { %p2397_p6 = por %p2396_p5, %p2395_p4 }
   0xd   :  { %p2398_p7 = pnand %p2397_p6, %p2391_p3 }
   0xf   :  { %2401 = shalt.err (!%p2398_p7)
}
  0x10   :  { %s2429_s7 = smov 256   ;;  %s2430_s8 = smov 16  }
  0x11   :  { %26 = dma.hbm_to_vmem [thread:$0]  %s3009_s1, 4096, %s21_s22, [#allocation3], %s2429_s7, %s2429_s7, %s2430_s8  }
  0x12   :  { %s2431_s11 = smov [#allocation4]   ;;  %s2402_s15 = scalar_lea.hbm %s3011_s3, 4096 }
  0x13   :  { %s34_s12 = sshll.u32 %s2431_s11, 4  ;;  %p2403_p8 = scmp.ne.s32.totalorder %s3011_s3, %s2402_s15  ;;  %s35_s12 = int_to_ptr.vmem [resolvable:$true] %s34_s12 }
  0x14   :  { %p2406_p9 = scmp.lt.u32.totalorder %s2402_s15, %s3011_s3 }
  0x16   :  { %p2408_p10 = pnand %p2406_p9, %p2403_p8 }
  0x18   :  { %2411 = shalt.err (!%p2408_p10)
}
  0x19   :  { %s2412_s20 = scalar_lea.vmem %s35_s12, 4096  ;;  %p2417_p12 = scmp.lt.s32.totalorder %s35_s12, %s35_s12 }
  0x1a   :  { %p2413_p11 = scmp.ne.s32.totalorder %s35_s12, %s2412_s20  ;;  %p2418_p13 = scmp.lt.s32.totalorder %s2412_s20, %s2412_s20 }
  0x1c   :  { %p2419_p0 = por %p2418_p13, %p2417_p12 }
  0x1e   :  { %p2420_p1 = pnand %p2419_p0, %p2413_p11 }
  0x20   :  { %2423 = shalt.err (!%p2420_p1)
}
  0x21   :  { %s2432_s1 = smov 64   ;;  %s2433_s21 = smov 4  }
  0x22   :  { %40 = dma.hbm_to_vmem [thread:$0]  %s3011_s3, 4096, %s35_s12, [#allocation5], %s2432_s1, %s2432_s1, %s2433_s21  }
  0x23   :  { %2424 = dma.done.wait [#allocation3], 4096  }
  0x24   :  { %2425 = vsyncadd [#allocation3], 4294963200 }
  0x25   :  { %2426 = dma.done.wait [#allocation5], 4096  }
  0x26   :  { %2427 = vsyncadd [#allocation5], 4294963200  ;;  %v2434_v0 = vmov 0   ;;  %v2276_v1 = vld [vmem:[#allocation2 + $0x4] ss:$16 sps:$4 sm:$0xff]   ;;  %v2513_v23 = vld [vmem:[%s3008_s0 + $0x8] sm:$0xff]  }
  0x27   :  { %426 = vmatprep.mubr.bf16.mxu0 %v2434_v0  ;;  %546 = vmatprep.mubr.bf16.mxu1 %v2434_v0  ;;  %v2278_v2 = vld [vmem:[#allocation2] ss:$16 sps:$4 sm:$0xff]   ;;  %v2279_v3 = vld [vmem:[#allocation2 + $0x24] ss:$16 sps:$4 sm:$0xff]   ;;  %v2304_v17 = vld [vmem:[#allocation2 + $0xc] ss:$16 sps:$4 sm:$0xff]  }
  0x28   :  { %394 = vmatprep.subr.bf16.mxu0 %v2276_v1  ;;  %2253 = vmatprep.subr.bf16.mxu1 %v2276_v1  ;;  %v2281_v4 = vld [vmem:[#allocation2 + $0x20] ss:$16 sps:$4 sm:$0xff]   ;;  %v2282_v5 = vld [vmem:[#allocation2 + $0x44] ss:$16 sps:$4 sm:$0xff]   ;;  %v2302_v20 = vld [vmem:[#allocation2 + $0x8] ss:$16 sps:$4 sm:$0xff]  }
  0x29   :  { %395 = vmatpush1.bf16.msra.mxu0 %v2278_v2  ;;  %2261 = vmatpush1.bf16.msra.mxu1 %v2278_v2  ;;  %v2284_v6 = vld [vmem:[#allocation2 + $0x40] ss:$16 sps:$4 sm:$0xff]   ;;  %v2285_v7 = vld [vmem:[#allocation2 + $0x64] ss:$16 sps:$4 sm:$0xff]   ;;  %v2307_v21 = vld [vmem:[#allocation2 + $0x2c] ss:$16 sps:$4 sm:$0xff]  }
  0x2a   :  { %396 = vmatprep.subr.bf16.mxu0 %v2279_v3  ;;  %2254 = vmatprep.subr.bf16.mxu1 %v2279_v3  ;;  %v2287_v8 = vld [vmem:[#allocation2 + $0x60] ss:$16 sps:$4 sm:$0xff]   ;;  %v2288_v9 = vld [vmem:[#allocation2 + $0x84] ss:$16 sps:$4 sm:$0xff]   ;;  %v2305_v22 = vld [vmem:[#allocation2 + $0x28] ss:$16 sps:$4 sm:$0xff]  }
  0x2b   :  { %v2290_v10 = vld [vmem:[#allocation2 + $0x80] ss:$16 sps:$4 sm:$0xff]   ;;  %v2291_v11 = vld [vmem:[#allocation2 + $0xa4] ss:$16 sps:$4 sm:$0xff]   ;;  %v2312_v24 = vld [vmem:[#allocation2 + $0x4c] ss:$16 sps:$4 sm:$0xff]  }
  0x2c   :  { %v2293_v12 = vld [vmem:[#allocation2 + $0xa0] ss:$16 sps:$4 sm:$0xff]   ;;  %v2294_v13 = vld [vmem:[#allocation2 + $0xc4] ss:$16 sps:$4 sm:$0xff]   ;;  %v2518_v25 = vld [vmem:[%s3008_s0 + $0x68] sm:$0xff]  }
  0x2d   :  { %397 = vmatpush1.bf16.msra.mxu0 %v2281_v4  ;;  %2262 = vmatpush1.bf16.msra.mxu1 %v2281_v4  ;;  %v2296_v14 = vld [vmem:[#allocation2 + $0xc0] ss:$16 sps:$4 sm:$0xff]   ;;  %v2297_v15 = vld [vmem:[#allocation2 + $0xe4] ss:$16 sps:$4 sm:$0xff]   ;;  %v2310_v26 = vld [vmem:[#allocation2 + $0x48] ss:$16 sps:$4 sm:$0xff]  }
  0x2e   :  { %398 = vmatprep.subr.bf16.mxu0 %v2282_v5  ;;  %2255 = vmatprep.subr.bf16.mxu1 %v2282_v5  ;;  %v2299_v16 = vld [vmem:[#allocation2 + $0xe0] ss:$16 sps:$4 sm:$0xff]   ;;  %v2315_v27 = vld [vmem:[#allocation2 + $0x6c] ss:$16 sps:$4 sm:$0xff]   ;;  %v2313_v28 = vld [vmem:[#allocation2 + $0x68] ss:$16 sps:$4 sm:$0xff]  }
  0x2f   :  { %v2499_v18 = vld [vmem:[%s3008_s0] sm:$0xff]   ;;  %v2320_v29 = vld [vmem:[#allocation2 + $0x8c] ss:$16 sps:$4 sm:$0xff]   ;;  %v2527_v30 = vld [vmem:[%s3008_s0 + $0x10] sm:$0xff]  }
  0x30   :  { %v2504_v19 = vld [vmem:[%s3008_s0 + $0x60] sm:$0xff]   ;;  %v2532_v31 = vld [vmem:[%s3008_s0 + $0x70] sm:$0xff]   ;;  %v2318_v32 = vld [vmem:[#allocation2 + $0x88] ss:$16 sps:$4 sm:$0xff]  }
  0x31   :  { %399 = vmatpush1.bf16.msra.mxu0 %v2284_v6  ;;  %2263 = vmatpush1.bf16.msra.mxu1 %v2284_v6  ;;  %v2323_v33 = vld [vmem:[#allocation2 + $0xac] ss:$16 sps:$4 sm:$0xff]   ;;  %v2321_v34 = vld [vmem:[#allocation2 + $0xa8] ss:$16 sps:$4 sm:$0xff]   ;;  %v2344_v40 = vld [vmem:[#allocation4 + $0x40] sm:$0xff]  }
  0x32   :  { %400 = vmatprep.subr.bf16.mxu0 %v2285_v7  ;;  %2256 = vmatprep.subr.bf16.mxu1 %v2285_v7  ;;  %v2328_v35 = vld [vmem:[#allocation2 + $0xcc] ss:$16 sps:$4 sm:$0xff]   ;;  %v2326_v38 = vld [vmem:[#allocation2 + $0xc8] ss:$16 sps:$4 sm:$0xff]   ;;  %v2346_v41 = vld [vmem:[#allocation4] sm:$0xff]  }
  0x33   :  { %v2541_v36 = vld [vmem:[%s3008_s0 + $0x18] sm:$0xff]   ;;  %v2348_v43 = vld [vmem:[#allocation4 + $0x48] sm:$0xff]   ;;  %v2340_v44 = vld [vmem:[#allocation4 + $0xc0] sm:$0xff]  }
  0x34   :  { %v2546_v37 = vld [vmem:[%s3008_s0 + $0x78] sm:$0xff]   ;;  %v2555_v45 = vld [vmem:[%s3008_s0 + $0x20] sm:$0xff]   ;;  %v2342_v47 = vld [vmem:[#allocation4 + $0xc8] sm:$0xff]  }
  0x35   :  { %401 = vmatpush1.bf16.msra.mxu0 %v2287_v8  ;;  %2264 = vmatpush1.bf16.msra.mxu1 %v2287_v8  ;;  %v2331_v39 = vld [vmem:[#allocation2 + $0xec] ss:$16 sps:$4 sm:$0xff]   ;;  %v2329_v42 = vld [vmem:[#allocation2 + $0xe8] ss:$16 sps:$4 sm:$0xff]   ;;  %v2341_v46 = vld [vmem:[#allocation4 + $0x80] sm:$0xff]  }
  0x36   :  { %402 = vmatprep.subr.bf16.mxu0 %v2288_v9  ;;  %2257 = vmatprep.subr.bf16.mxu1 %v2288_v9  ;;  %v2349_v48 = vld [vmem:[#allocation4 + $0x8] sm:$0xff]   ;;  %v2352_v49 = vld [vmem:[#allocation4 + $0x50] sm:$0xff]   ;;  %v2356_v53 = vld [vmem:[#allocation4 + $0x58] sm:$0xff]  }
  0x37   :  { %v2343_v50 = vld [vmem:[#allocation4 + $0x88] sm:$0xff]   ;;  %v2353_v51 = vld [vmem:[#allocation4 + $0x10] sm:$0xff]   ;;  %v2357_v56 = vld [vmem:[#allocation4 + $0x18] sm:$0xff]  }
  0x38   :  { %v2345_v52 = vld [vmem:[#allocation4 + $0xd0] sm:$0xff]   ;;  %v2333_v54 = vld [vmem:[%s3008_s0 + $0x28] sm:$0xff]   ;;  %v2350_v57 = vld [vmem:[#allocation4 + $0xd8] sm:$0xff]  }
  0x39   :  { %403 = vmatpush1.bf16.msra.mxu0 %v2290_v10  ;;  %2265 = vmatpush1.bf16.msra.mxu1 %v2290_v10  ;;  %v2347_v55 = vld [vmem:[#allocation4 + $0x90] sm:$0xff]   ;;  %v2358_v58 = vld [vmem:[#allocation4 + $0x60] sm:$0xff]   ;;  %v2351_v59 = vld [vmem:[#allocation4 + $0x98] sm:$0xff]  }
  0x3a   :  { %404 = vmatprep.subr.bf16.mxu0 %v2291_v11  ;;  %2258 = vmatprep.subr.bf16.mxu1 %v2291_v11  ;;  %v2360_v60 = vld [vmem:[#allocation4 + $0x20] sm:$0xff]   ;;  %v2362_v62 = vld [vmem:[#allocation4 + $0x68] sm:$0xff]   ;;  %v2334_v63 = vld [vmem:[%s3008_s0 + $0x30] sm:$0xff]  }
  0x3b   :  { %v2354_v61 = vld [vmem:[#allocation4 + $0xe0] sm:$0xff]   ;;  %v2359_v2 = vld [vmem:[#allocation4 + $0xe8] sm:$0xff]   ;;  %v2335_v4 = vld [vmem:[%s3008_s0 + $0x38] sm:$0xff]  }
  0x3c   :  { %v2355_v1 = vld [vmem:[#allocation4 + $0xa0] sm:$0xff]   ;;  %v2361_v3 = vld [vmem:[#allocation4 + $0xa8] sm:$0xff]   ;;  %v2338_v7 = vld [vmem:[%s3008_s0 + $0x50] sm:$0xff]  }
  0x3d   :  { %405 = vmatpush1.bf16.msra.mxu0 %v2293_v12  ;;  %2266 = vmatpush1.bf16.msra.mxu1 %v2293_v12  ;;  %v2336_v5 = vld [vmem:[%s3008_s0 + $0x40] sm:$0xff]   ;;  %v2337_v6 = vld [vmem:[%s3008_s0 + $0x48] sm:$0xff]   ;;  %v2339_v9 = vld [vmem:[%s3008_s0 + $0x58] sm:$0xff]  }
  0x3e   :  { %406 = vmatprep.subr.bf16.mxu0 %v2294_v13  ;;  %2259 = vmatprep.subr.bf16.mxu1 %v2294_v13  ;;  %v2363_v8 = vld [vmem:[#allocation4 + $0x28] sm:$0xff]   ;;  %v2364_v10 = vld [vmem:[#allocation4 + $0x70] sm:$0xff]   ;;  %v2366_v12 = vld [vmem:[#allocation4 + $0x78] sm:$0xff]  }
  0x3f   :  { %v2365_v11 = vld [vmem:[#allocation4 + $0x30] sm:$0xff]   ;;  %v2367_v13 = vld [vmem:[#allocation4 + $0x38] sm:$0xff]  }
  0x41   :  { %407 = vmatpush1.bf16.msra.mxu0 %v2296_v14  ;;  %2267 = vmatpush1.bf16.msra.mxu1 %v2296_v14  ;;  %v2368_v14 = vld [vmem:[#allocation4 + $0xf0] sm:$0xff]  }
  0x42   :  { %408 = vmatprep.subr.bf16.mxu0 %v2297_v15  ;;  %2260 = vmatprep.subr.bf16.mxu1 %v2297_v15  ;;  %v2369_v15 = vld [vmem:[#allocation4 + $0xb0] sm:$0xff]  }
  0x45   :  { %409 = vmatpush1.bf16.msra.mxu0 %v2299_v16  ;;  %2268 = vmatpush1.bf16.msra.mxu1 %v2299_v16  ;;  %v2370_v16 = vld [vmem:[#allocation4 + $0xf8] sm:$0xff]  }
  0x46   :  { %587 = vmatprep.subr.bf16.mxu1 %v2304_v17  ;;  %1957 = vmatprep.subr.bf16.mxu0 %v2344_v40  ;;  %v2371_v17 = vld [vmem:[#allocation4 + $0xb8] sm:$0xff]  }
  0x48   :  { %427 = vmatmul.mubr.bf16.vlgmr.msra.gmra.mrb[0].mxu0 %v2499_v18  ;;  %547 = vmatmul.mubr.bf16.vlgmr.msra.gmra.mrb[0].mxu1 %v2504_v19 }
  0x49   :  { %588 = vmatpush1.bf16.msra.mxu1 %v2302_v20  ;;  %436 = vmatprep.mubr.bf16.mxu0 %v2434_v0 }
  0x4a   :  { %589 = vmatprep.subr.bf16.mxu1 %v2307_v21  ;;  %556 = vmatprep.mubr.bf16.mxu1 %v2434_v0 }
  0x4b   :  { %1958 = vmatpush3.bf16.msra.mxu0 %v2346_v41 }
  0x4c   :  { %1959 = vmatprep.subr.bf16.mxu0 %v2348_v43 }
  0x4d   :  { %590 = vmatpush1.bf16.msra.mxu1 %v2305_v22 }
  0x4e   :  { %591 = vmatprep.subr.bf16.mxu1 %v2312_v24 }
  0x4f   :  { %1960 = vmatpush3.bf16.msra.mxu0 %v2349_v48 }
  0x50   :  { %437 = vmatmul.mubr.bf16.gmra.mrb[4].mxu0 %v2513_v23  ;;  %557 = vmatmul.mubr.bf16.gmra.mrb[4].mxu1 %v2518_v25 }
  0x51   :  { %592 = vmatpush1.bf16.msra.mxu1 %v2310_v26  ;;  %446 = vmatprep.mubr.bf16.mxu0 %v2434_v0 }
  0x52   :  { %593 = vmatprep.subr.bf16.mxu1 %v2315_v27  ;;  %566 = vmatprep.mubr.bf16.mxu1 %v2434_v0 }
  0x53   :  { %1961 = vmatprep.subr.bf16.mxu0 %v2352_v49 }
  0x54   :  { %1962 = vmatpush3.bf16.msra.mxu0 %v2353_v51 }
  0x55   :  { %594 = vmatpush1.bf16.msra.mxu1 %v2313_v28  ;;  %1963 = vmatprep.subr.bf16.mxu0 %v2356_v53 }
  0x56   :  { %595 = vmatprep.subr.bf16.mxu1 %v2320_v29 }
  0x58   :  { %447 = vmatmul.mubr.bf16.gmra.mrb[8].mxu0 %v2527_v30  ;;  %567 = vmatmul.mubr.bf16.gmra.mrb[8].mxu1 %v2532_v31 }
  0x59   :  { %596 = vmatpush1.bf16.msra.mxu1 %v2318_v32  ;;  %456 = vmatprep.mubr.bf16.mxu0 %v2434_v0 }
  0x5a   :  { %597 = vmatprep.subr.bf16.mxu1 %v2323_v33  ;;  %576 = vmatprep.mubr.bf16.mxu1 %v2434_v0 }
  0x5b   :  { %1964 = vmatpush3.bf16.msra.mxu0 %v2357_v56 }
  0x5c   :  { %1965 = vmatprep.subr.bf16.mxu0 %v2358_v58 }
  0x5d   :  { %598 = vmatpush1.bf16.msra.mxu1 %v2321_v34 }
  0x5e   :  { %599 = vmatprep.subr.bf16.mxu1 %v2328_v35 }
  0x5f   :  { %1966 = vmatpush3.bf16.msra.mxu0 %v2360_v60 }
  0x60   :  { %457 = vmatmul.mubr.bf16.gmra.mrb[12].mxu0 %v2541_v36  ;;  %577 = vmatmul.mubr.bf16.gmra.mrb[12].mxu1 %v2546_v37 }
  0x61   :  { %600 = vmatpush1.bf16.msra.mxu1 %v2326_v38  ;;  %466 = vmatprep.mubr.bf16.mxu0 %v2434_v0 }
  0x62   :  { %601 = vmatprep.subr.bf16.mxu1 %v2331_v39  ;;  %619 = vmatprep.mubr.bf16.mxu1 %v2434_v0 }
  0x63   :  { %1967 = vmatprep.subr.bf16.mxu0 %v2362_v62 }
  0x64   :  { %1968 = vmatpush3.bf16.msra.mxu0 %v2363_v8 }
  0x65   :  { %602 = vmatpush1.bf16.msra.mxu1 %v2329_v42  ;;  %1969 = vmatprep.subr.bf16.mxu0 %v2364_v10 }
  0x66   :  { %2069 = vmatprep.subr.bf16.mxu1 %v2340_v44 }
  0x68   :  { %467 = vmatmul.mubr.bf16.gmra.mrb[16].mxu0 %v2555_v45  ;;  %620 = vmatmul.mubr.bf16.vlgmr.msra.gmra.mrb[16].mxu1 %v2499_v18  ;;  %v118_v18 = vlaneseq }
  0x69   :  { %476 = vmatprep.mubr.bf16.mxu0 %v2434_v0  ;;  %629 = vmatprep.mubr.bf16.mxu1 %v2434_v0 }
  0x6a   :  { %2070 = vmatpush3.bf16.msra.mxu1 %v2341_v46  ;;  %1970 = vmatpush3.bf16.msra.mxu0 %v2365_v11  ;;  %v2610_v20 = vshrl.u32 %v118_v18, 7 }
  0x6b   :  { %2071 = vmatprep.subr.bf16.mxu1 %v2342_v47  ;;  %1971 = vmatprep.subr.bf16.mxu0 %v2366_v12 }
  0x6c   :  { %v120_v21 = vsub.s32 0, %v2610_v20  ;;  %v124_v22 = vsub.s32 1, %v2610_v20 }
  0x6e   :  { %2072 = vmatpush3.bf16.msra.mxu1 %v2343_v50  ;;  %1972 = vmatpush3.bf16.msra.mxu0 %v2367_v13 }
  0x6f   :  { %2073 = vmatprep.subr.bf16.mxu1 %v2345_v52 }
  0x70   :  { %477 = vmatmul.mubr.bf16.gmra.mrb[20].mxu0 %v2333_v54  ;;  %630 = vmatmul.mubr.bf16.gmra.mrb[20].mxu1 %v2513_v23 }
  0x71   :  { %486 = vmatprep.mubr.bf16.mxu0 %v2434_v0  ;;  %639 = vmatprep.mubr.bf16.mxu1 %v2434_v0 }
  0x72   :  { %2074 = vmatpush3.bf16.msra.mxu1 %v2347_v55 }
  0x73   :  { %2075 = vmatprep.subr.bf16.mxu1 %v2350_v57 }
  0x76   :  { %2076 = vmatpush3.bf16.msra.mxu1 %v2351_v59 }
  0x77   :  { %2077 = vmatprep.subr.bf16.mxu1 %v2354_v61 }
  0x78   :  { %487 = vmatmul.mubr.bf16.gmra.mrb[24].mxu0 %v2334_v63  ;;  %640 = vmatmul.mubr.bf16.gmra.mrb[24].mxu1 %v2527_v30 }
  0x79   :  { %496 = vmatprep.mubr.bf16.mxu0 %v2434_v0  ;;  %649 = vmatprep.mubr.bf16.mxu1 %v2434_v0 }
  0x7a   :  { %2078 = vmatpush3.bf16.msra.mxu1 %v2355_v1 }
  0x7b   :  { %2079 = vmatprep.subr.bf16.mxu1 %v2359_v2 }
  0x7e   :  { %2080 = vmatpush3.bf16.msra.mxu1 %v2361_v3 }
  0x7f   :  { %2081 = vmatprep.subr.bf16.mxu1 %v2368_v14 }
  0x80   :  { %497 = vmatmul.mubr.bf16.gmra.mrb[28].mxu0 %v2335_v4  ;;  %650 = vmatmul.mubr.bf16.gmra.mrb[28].mxu1 %v2541_v36 }
  0x81   :  { %506 = vmatprep.mubr.bf16.mxu0 %v2434_v0  ;;  %659 = vmatprep.mubr.bf16.mxu1 %v2434_v0 }
  0x82   :  { %2082 = vmatpush3.bf16.msra.mxu1 %v2369_v15 }
  0x83   :  { %2083 = vmatprep.subr.bf16.mxu1 %v2370_v16 }
  0x86   :  { %2084 = vmatpush3.bf16.msra.mxu1 %v2371_v17 }
  0x88   :  { %507 = vmatmul.mubr.bf16.gmra.mrb[32].mxu0 %v2336_v5  ;;  %660 = vmatmul.mubr.bf16.gmra.mrb[32].mxu1 %v2555_v45 }
  0x89   :  { %516 = vmatprep.mubr.bf16.mxu0 %v2434_v0  ;;  %669 = vmatprep.mubr.bf16.mxu1 %v2434_v0 }
  0x90   :  { %517 = vmatmul.mubr.bf16.gmra.mrb[36].mxu0 %v2337_v6  ;;  %670 = vmatmul.mubr.bf16.gmra.mrb[36].mxu1 %v2333_v54 }
  0x91   :  { %526 = vmatprep.mubr.bf16.mxu0 %v2434_v0  ;;  %679 = vmatprep.mubr.bf16.mxu1 %v2434_v0 }
  0x98   :  { %527 = vmatmul.mubr.bf16.gmra.mrb[40].mxu0 %v2338_v7  ;;  %680 = vmatmul.mubr.bf16.gmra.mrb[40].mxu1 %v2334_v63 }
  0x99   :  { %536 = vmatprep.mubr.bf16.mxu0 %v2434_v0  ;;  %689 = vmatprep.mubr.bf16.mxu1 %v2434_v0 }
  0xa0   :  { %537 = vmatmul.mubr.bf16.gmra.mrb[44].mxu0 %v2339_v9  ;;  %690 = vmatmul.mubr.bf16.gmra.mrb[44].mxu1 %v2335_v4 }
  0xa1   :  { %699 = vmatprep.mubr.bf16.mxu1 %v2434_v0 }
  0xa8   :  { %700 = vmatmul.mubr.bf16.gmra.mrb[48].mxu1 %v2336_v5 }
  0xa9   :  { %709 = vmatprep.mubr.bf16.mxu1 %v2434_v0 }
  0xb0   :  { %710 = vmatmul.mubr.bf16.gmra.mrb[52].mxu1 %v2337_v6 }
  0xb1   :  { %719 = vmatprep.mubr.bf16.mxu1 %v2434_v0 }
  0xb8   :  { %720 = vmatmul.mubr.bf16.gmra.mrb[56].mxu1 %v2338_v7 }
  0xb9   :  { %729 = vmatprep.mubr.bf16.mxu1 %v2434_v0 }
  0xc0   :  { %730 = vmatmul.mubr.bf16.gmra.mrb[60].mxu1 %v2339_v9 }
  0xc1   :  { %739 = vmatprep.mubr.bf16.mxu1 %v2434_v0 }
  0xc8   :  { %740 = vmatmul.mubr.bf16.gmra.mrb[64].mxu1 %v2504_v19  ;;  %v2616_v19 = vld [vmem:[%s3010_s2] sm:$0xf] }
  0xc9   :  { %749 = vmatprep.mubr.bf16.mxu1 %v2434_v0  ;;  %v2620_v23 = vrot.slane %v2616_v19, %v120_v21  ;;  %v2623_v24 = vrot.slane %v2616_v19, %v124_v22 }
  0xd0   :  { %750 = vmatmul.mubr.bf16.gmra.mrb[68].mxu1 %v2518_v25 }
  0xd1   :  { %759 = vmatprep.mubr.bf16.mxu1 %v2434_v0 }
  0xd8   :  { %760 = vmatmul.mubr.bf16.gmra.mrb[72].mxu1 %v2532_v31 }
  0xd9   :  { %769 = vmatprep.mubr.bf16.mxu1 %v2434_v0 }
  0xe0   :  { %770 = vmatmul.mubr.bf16.gmra.mrb[76].mxu1 %v2546_v37 }
 0x11b   :  { %v428_v0 = vpop.f32.mrb[0].mxu0  ;;  %v548_v25 = vpop.f32.mrb[0].mxu1 }
 0x11c   :  { %v429_v26 = vadd.f32 %v428_v0, %v2620_v23  ;;  %v549_v27 = vadd.f32 %v548_v25, %v2620_v23  ;;  %v430_v28 = vpop.f32.mrb[1].mxu0  ;;  %v550_v29 = vpop.f32.mrb[1].mxu1 }
 0x11d   :  { %v431_v30 = vadd.f32 %v430_v28, %v2623_v24  ;;  %v551_v31 = vadd.f32 %v550_v29, %v2623_v24  ;;  %v432_v32 = vpop.f32.mrb[2].mxu0  ;;  %v552_v33 = vpop.f32.mrb[2].mxu1 }
 0x11e   :  { %v780_v34 = vmax.f32 %v429_v26, 0.0  ;;  %v433_v35 = vadd.f32 %v432_v32, %v2620_v23  ;;  %v553_v36 = vadd.f32 %v552_v33, %v2620_v23  ;;  %v434_v37 = vpop.f32.mrb[3].mxu0  ;;  %v554_v38 = vpop.f32.mrb[3].mxu1  ;;  %v876_v42 = vmax.f32 %v549_v27, 0.0 }
 0x11f   :  { %v781_v39 = vmax.f32 %v431_v30, 0.0  ;;  %v435_v40 = vadd.f32 %v434_v37, %v2623_v24  ;;  %v555_v41 = vadd.f32 %v554_v38, %v2623_v24  ;;  %v877_v45 = vmax.f32 %v551_v31, 0.0 }
 0x120   :  { %v784_v43 = vmax.f32 %v433_v35, 0.0  ;;  %v880_v44 = vmax.f32 %v553_v36, 0.0 }
 0x121   :  { %v785_v46 = vmax.f32 %v435_v40, 0.0  ;;  %v881_v47 = vmax.f32 %v555_v41, 0.0 }
 0x122   :  { %v908_v48 = vpack.c.bf16 %v784_v43, %v780_v34  ;;  %v2633_v49 = vpack.c.bf16 %v880_v44, %v876_v42 }
 0x123   :  { %v909_v50 = vpack.c.bf16 %v785_v46, %v781_v39  ;;  %v2635_v51 = vpack.c.bf16 %v881_v47, %v877_v45  ;;  %v438_v52 = vpop.f32.mrb[4].mxu0  ;;  %v558_v53 = vpop.f32.mrb[4].mxu1 }
 0x124   :  { %v439_v54 = vadd.f32 %v438_v52, %v2620_v23  ;;  %v559_v55 = vadd.f32 %v558_v53, %v2620_v23  ;;  %v440_v56 = vpop.f32.mrb[5].mxu0  ;;  %v560_v57 = vpop.f32.mrb[5].mxu1 }
 0x125   :  { %v441_v58 = vadd.f32 %v440_v56, %v2623_v24  ;;  %v561_v59 = vadd.f32 %v560_v57, %v2623_v24  ;;  %v442_v60 = vpop.f32.mrb[6].mxu0  ;;  %v562_v61 = vpop.f32.mrb[6].mxu1  ;;  %1260 = vmatprep.mubr.bf16.mxu0 %v909_v50  ;;  %v128_v56 = vsub.s32 2, %v2610_v20 }
 0x126   :  { %v788_v62 = vmax.f32 %v439_v54, 0.0  ;;  %v443_v63 = vadd.f32 %v442_v60, %v2620_v23  ;;  %v563_v1 = vadd.f32 %v562_v61, %v2620_v23  ;;  %v444_v2 = vpop.f32.mrb[7].mxu0  ;;  %v564_v3 = vpop.f32.mrb[7].mxu1  ;;  %1261 = vmatmul.mubr.bf16.vlgmr.msra.gmra.mrb[48].mxu0 %v908_v48  ;;  %v884_v7 = vmax.f32 %v559_v55, 0.0 }
 0x127   :  { %v789_v4 = vmax.f32 %v441_v58, 0.0  ;;  %v445_v5 = vadd.f32 %v444_v2, %v2623_v24  ;;  %v565_v6 = vadd.f32 %v564_v3, %v2623_v24  ;;  %v885_v10 = vmax.f32 %v561_v59, 0.0 }
 0x128   :  { %v792_v8 = vmax.f32 %v443_v63, 0.0  ;;  %v888_v9 = vmax.f32 %v563_v1, 0.0  ;;  %v132_v61 = vsub.s32 3, %v2610_v20 }
 0x129   :  { %v793_v11 = vmax.f32 %v445_v5, 0.0  ;;  %v889_v12 = vmax.f32 %v565_v6, 0.0 }
 0x12a   :  { %v912_v13 = vpack.c.bf16 %v792_v8, %v788_v62  ;;  %v2645_v14 = vpack.c.bf16 %v888_v9, %v884_v7 }
 0x12b   :  { %v913_v15 = vpack.c.bf16 %v793_v11, %v789_v4  ;;  %v2647_v16 = vpack.c.bf16 %v889_v12, %v885_v10  ;;  %v448_v17 = vpop.f32.mrb[8].mxu0  ;;  %v568_v18 = vpop.f32.mrb[8].mxu1  ;;  %v2672_v10 = vrot.slane %v2616_v19, %v128_v56 }
 0x12c   :  { %v449_v21 = vadd.f32 %v448_v17, %v2620_v23  ;;  %v569_v22 = vadd.f32 %v568_v18, %v2620_v23  ;;  %v450_v0 = vpop.f32.mrb[9].mxu0  ;;  %v570_v25 = vpop.f32.mrb[9].mxu1 }
 0x12d   :  { %v451_v26 = vadd.f32 %v450_v0, %v2623_v24  ;;  %v571_v27 = vadd.f32 %v570_v25, %v2623_v24  ;;  %v452_v28 = vpop.f32.mrb[10].mxu0  ;;  %v572_v29 = vpop.f32.mrb[10].mxu1  ;;  %1268 = vmatprep.mubr.bf16.mxu0 %v913_v15 }
 0x12e   :  { %v796_v30 = vmax.f32 %v449_v21, 0.0  ;;  %v453_v31 = vadd.f32 %v452_v28, %v2620_v23  ;;  %v573_v32 = vadd.f32 %v572_v29, %v2620_v23  ;;  %v454_v33 = vpop.f32.mrb[11].mxu0  ;;  %v574_v34 = vpop.f32.mrb[11].mxu1  ;;  %1269 = vmatmul.mubr.bf16.gmra.mrb[52].mxu0 %v912_v13  ;;  %v892_v38 = vmax.f32 %v569_v22, 0.0 }
 0x12f   :  { %v797_v35 = vmax.f32 %v451_v26, 0.0  ;;  %v455_v36 = vadd.f32 %v454_v33, %v2623_v24  ;;  %v575_v37 = vadd.f32 %v574_v34, %v2623_v24  ;;  %v893_v41 = vmax.f32 %v571_v27, 0.0 }
 0x130   :  { %v800_v39 = vmax.f32 %v453_v31, 0.0  ;;  %v896_v40 = vmax.f32 %v573_v32, 0.0  ;;  %v2675_v13 = vrot.slane %v2616_v19, %v132_v61 }
 0x131   :  { %v801_v42 = vmax.f32 %v455_v36, 0.0  ;;  %v897_v43 = vmax.f32 %v575_v37, 0.0  ;;  %v2372_v37 = vld [vmem:[%s3012_s4] sm:$0xff]  }
 0x132   :  { %v916_v44 = vpack.c.bf16 %v800_v39, %v796_v30  ;;  %v2657_v45 = vpack.c.bf16 %v896_v40, %v892_v38  ;;  %v2373_v38 = vld [vmem:[%s3012_s4 + $0x8] sm:$0xff]   ;;  %2205 = vmatprep.subr.bf16.mxu0 %v2372_v37 }
 0x133   :  { %v917_v46 = vpack.c.bf16 %v801_v42, %v797_v35  ;;  %v2659_v47 = vpack.c.bf16 %v897_v43, %v893_v41  ;;  %v458_v48 = vpop.f32.mrb[12].mxu0  ;;  %v578_v50 = vpop.f32.mrb[12].mxu1  ;;  %2206 = vmatpush3.bf16.msra.mxu0 %v2372_v37 }
 0x134   :  { %v459_v52 = vadd.f32 %v458_v48, %v2620_v23  ;;  %v579_v53 = vadd.f32 %v578_v50, %v2620_v23  ;;  %v460_v54 = vpop.f32.mrb[13].mxu0  ;;  %v580_v55 = vpop.f32.mrb[13].mxu1  ;;  %2207 = vmatprep.subr.bf16.mxu0 %v2373_v38 }
 0x135   :  { %v461_v57 = vadd.f32 %v460_v54, %v2623_v24  ;;  %v581_v58 = vadd.f32 %v580_v55, %v2623_v24  ;;  %v462_v59 = vpop.f32.mrb[14].mxu0  ;;  %v582_v60 = vpop.f32.mrb[14].mxu1  ;;  %1276 = vmatprep.mubr.bf16.mxu0 %v917_v46 }
 0x136   :  { %v804_v62 = vmax.f32 %v459_v52, 0.0  ;;  %v463_v63 = vadd.f32 %v462_v59, %v2620_v23  ;;  %v583_v1 = vadd.f32 %v582_v60, %v2620_v23  ;;  %v464_v2 = vpop.f32.mrb[15].mxu0  ;;  %v584_v3 = vpop.f32.mrb[15].mxu1  ;;  %1277 = vmatmul.mubr.bf16.gmra.mrb[56].mxu0 %v916_v44  ;;  %v900_v7 = vmax.f32 %v579_v53, 0.0 }
 0x137   :  { %v805_v4 = vmax.f32 %v461_v57, 0.0  ;;  %v465_v5 = vadd.f32 %v464_v2, %v2623_v24  ;;  %v585_v6 = vadd.f32 %v584_v3, %v2623_v24  ;;  %v901_v20 = vmax.f32 %v581_v58, 0.0  ;;  %2208 = vmatpush3.bf16.msra.mxu0 %v2373_v38 }
 0x138   :  { %v808_v8 = vmax.f32 %v463_v63, 0.0  ;;  %v904_v9 = vmax.f32 %v583_v1, 0.0 }
 0x139   :  { %v809_v11 = vmax.f32 %v465_v5, 0.0  ;;  %v905_v12 = vmax.f32 %v585_v6, 0.0 }
 0x13a   :  { %v920_v15 = vpack.c.bf16 %v808_v8, %v804_v62  ;;  %v2677_v17 = vpack.c.bf16 %v904_v9, %v900_v7  ;;  %v2374_v62 = vld [vmem:[%s3012_s4 + $0x10] sm:$0xff]  }
 0x13b   :  { %v921_v18 = vpack.c.bf16 %v809_v11, %v805_v4  ;;  %v2679_v21 = vpack.c.bf16 %v905_v12, %v901_v20  ;;  %v468_v22 = vpop.f32.mrb[16].mxu0  ;;  %v621_v0 = vpop.f32.mrb[16].mxu1  ;;  %2209 = vmatprep.subr.bf16.mxu0 %v2374_v62 }
 0x13c   :  { %v469_v25 = vadd.f32 %v468_v22, %v2620_v23  ;;  %v622_v26 = vadd.f32 %v621_v0, %v2672_v10  ;;  %v470_v27 = vpop.f32.mrb[17].mxu0  ;;  %v623_v28 = vpop.f32.mrb[17].mxu1  ;;  %2210 = vmatpush3.bf16.msra.mxu0 %v2374_v62 }
 0x13d   :  { %v471_v29 = vadd.f32 %v470_v27, %v2623_v24  ;;  %v624_v30 = vadd.f32 %v623_v28, %v2675_v13  ;;  %v472_v19 = vpop.f32.mrb[18].mxu0  ;;  %v625_v31 = vpop.f32.mrb[18].mxu1  ;;  %1284 = vmatprep.mubr.bf16.mxu0 %v921_v18 }
 0x13e   :  { %v812_v32 = vmax.f32 %v469_v25, 0.0  ;;  %v473_v33 = vadd.f32 %v472_v19, %v2620_v23  ;;  %v626_v34 = vadd.f32 %v625_v31, %v2672_v10  ;;  %v474_v35 = vpop.f32.mrb[19].mxu0  ;;  %v627_v36 = vpop.f32.mrb[19].mxu1  ;;  %1285 = vmatmul.mubr.bf16.gmra.mrb[60].mxu0 %v920_v15  ;;  %v782_v42 = vmax.f32 %v622_v26, 0.0 }
 0x13f   :  { %v813_v39 = vmax.f32 %v471_v29, 0.0  ;;  %v475_v40 = vadd.f32 %v474_v35, %v2623_v24  ;;  %v628_v41 = vadd.f32 %v627_v36, %v2675_v13  ;;  %v783_v46 = vmax.f32 %v624_v30, 0.0 }
 0x140   :  { %v816_v43 = vmax.f32 %v473_v33, 0.0  ;;  %v786_v44 = vmax.f32 %v626_v34, 0.0 }
 0x141   :  { %v817_v48 = vmax.f32 %v475_v40, 0.0  ;;  %v787_v50 = vmax.f32 %v628_v41, 0.0 }
 0x142   :  { %v924_v52 = vpack.c.bf16 %v816_v43, %v812_v32  ;;  %v910_v53 = vpack.c.bf16 %v786_v44, %v782_v42 }
 0x143   :  { %v925_v54 = vpack.c.bf16 %v817_v48, %v813_v39  ;;  %v911_v55 = vpack.c.bf16 %v787_v50, %v783_v46  ;;  %v478_v56 = vpop.f32.mrb[20].mxu0  ;;  %v631_v57 = vpop.f32.mrb[20].mxu1 }
 0x144   :  { %v479_v58 = vadd.f32 %v478_v56, %v2620_v23  ;;  %v632_v59 = vadd.f32 %v631_v57, %v2672_v10  ;;  %v480_v60 = vpop.f32.mrb[21].mxu0  ;;  %v633_v61 = vpop.f32.mrb[21].mxu1 }
 0x145   :  { %v481_v63 = vadd.f32 %v480_v60, %v2623_v24  ;;  %v634_v1 = vadd.f32 %v633_v61, %v2675_v13  ;;  %v482_v2 = vpop.f32.mrb[22].mxu0  ;;  %v635_v3 = vpop.f32.mrb[22].mxu1  ;;  %1292 = vmatprep.mubr.bf16.mxu0 %v925_v54  ;;  %1421 = vmatprep.mubr.bf16.mxu1 %v911_v55 }
 0x146   :  { %v820_v4 = vmax.f32 %v479_v58, 0.0  ;;  %v483_v5 = vadd.f32 %v482_v2, %v2620_v23  ;;  %v636_v6 = vadd.f32 %v635_v3, %v2672_v10  ;;  %v484_v7 = vpop.f32.mrb[23].mxu0  ;;  %v637_v8 = vpop.f32.mrb[23].mxu1  ;;  %1293 = vmatmul.mubr.bf16.gmra.mrb[64].mxu0 %v924_v52  ;;  %1422 = vmatmul.mubr.bf16.vlgmr.msra.gmra.mrb[80].mxu1 %v910_v53  ;;  %v790_v12 = vmax.f32 %v632_v59, 0.0 }
 0x147   :  { %v821_v9 = vmax.f32 %v481_v63, 0.0  ;;  %v485_v20 = vadd.f32 %v484_v7, %v2623_v24  ;;  %v638_v11 = vadd.f32 %v637_v8, %v2675_v13  ;;  %v791_v22 = vmax.f32 %v634_v1, 0.0 }
 0x148   :  { %v824_v15 = vmax.f32 %v483_v5, 0.0  ;;  %v794_v18 = vmax.f32 %v636_v6, 0.0 }
 0x149   :  { %v825_v0 = vmax.f32 %v485_v20, 0.0  ;;  %v795_v25 = vmax.f32 %v638_v11, 0.0 }
 0x14a   :  { %v928_v26 = vpack.c.bf16 %v824_v15, %v820_v4  ;;  %v914_v27 = vpack.c.bf16 %v794_v18, %v790_v12 }
 0x14b   :  { %v929_v28 = vpack.c.bf16 %v825_v0, %v821_v9  ;;  %v915_v29 = vpack.c.bf16 %v795_v25, %v791_v22  ;;  %v488_v30 = vpop.f32.mrb[24].mxu0  ;;  %v641_v19 = vpop.f32.mrb[24].mxu1 }
 0x14c   :  { %v489_v31 = vadd.f32 %v488_v30, %v2620_v23  ;;  %v642_v32 = vadd.f32 %v641_v19, %v2672_v10  ;;  %v490_v33 = vpop.f32.mrb[25].mxu0  ;;  %v643_v34 = vpop.f32.mrb[25].mxu1 }
 0x14d   :  { %v491_v35 = vadd.f32 %v490_v33, %v2623_v24  ;;  %v644_v36 = vadd.f32 %v643_v34, %v2675_v13  ;;  %v492_v37 = vpop.f32.mrb[26].mxu0  ;;  %v645_v38 = vpop.f32.mrb[26].mxu1  ;;  %1300 = vmatprep.mubr.bf16.mxu0 %v929_v28  ;;  %1429 = vmatprep.mubr.bf16.mxu1 %v915_v29 }
 0x14e   :  { %v828_v39 = vmax.f32 %v489_v31, 0.0  ;;  %v493_v40 = vadd.f32 %v492_v37, %v2620_v23  ;;  %v646_v41 = vadd.f32 %v645_v38, %v2672_v10  ;;  %v494_v42 = vpop.f32.mrb[27].mxu0  ;;  %v647_v43 = vpop.f32.mrb[27].mxu1  ;;  %1301 = vmatmul.mubr.bf16.gmra.mrb[68].mxu0 %v928_v26  ;;  %1430 = vmatmul.mubr.bf16.gmra.mrb[84].mxu1 %v914_v27  ;;  %v798_v50 = vmax.f32 %v642_v32, 0.0 }
 0x14f   :  { %v829_v44 = vmax.f32 %v491_v35, 0.0  ;;  %v495_v46 = vadd.f32 %v494_v42, %v2623_v24  ;;  %v648_v48 = vadd.f32 %v647_v43, %v2675_v13  ;;  %v799_v54 = vmax.f32 %v644_v36, 0.0 }
 0x150   :  { %v832_v52 = vmax.f32 %v493_v40, 0.0  ;;  %v802_v53 = vmax.f32 %v646_v41, 0.0 }
 0x151   :  { %v833_v55 = vmax.f32 %v495_v46, 0.0  ;;  %v803_v56 = vmax.f32 %v648_v48, 0.0 }
 0x152   :  { %v932_v57 = vpack.c.bf16 %v832_v52, %v828_v39  ;;  %v918_v58 = vpack.c.bf16 %v802_v53, %v798_v50 }
 0x153   :  { %v933_v59 = vpack.c.bf16 %v833_v55, %v829_v44  ;;  %v919_v60 = vpack.c.bf16 %v803_v56, %v799_v54  ;;  %v498_v61 = vpop.f32.mrb[28].mxu0  ;;  %v651_v62 = vpop.f32.mrb[28].mxu1 }
 0x154   :  { %v499_v63 = vadd.f32 %v498_v61, %v2620_v23  ;;  %v652_v1 = vadd.f32 %v651_v62, %v2672_v10  ;;  %v500_v2 = vpop.f32.mrb[29].mxu0  ;;  %v653_v3 = vpop.f32.mrb[29].mxu1 }
 0x155   :  { %v501_v4 = vadd.f32 %v500_v2, %v2623_v24  ;;  %v654_v5 = vadd.f32 %v653_v3, %v2675_v13  ;;  %v502_v6 = vpop.f32.mrb[30].mxu0  ;;  %v655_v7 = vpop.f32.mrb[30].mxu1  ;;  %1308 = vmatprep.mubr.bf16.mxu0 %v933_v59  ;;  %1437 = vmatprep.mubr.bf16.mxu1 %v919_v60 }
 0x156   :  { %v836_v8 = vmax.f32 %v499_v63, 0.0  ;;  %v503_v9 = vadd.f32 %v502_v6, %v2620_v23  ;;  %v656_v20 = vadd.f32 %v655_v7, %v2672_v10  ;;  %v504_v11 = vpop.f32.mrb[31].mxu0  ;;  %v657_v12 = vpop.f32.mrb[31].mxu1  ;;  %1309 = vmatmul.mubr.bf16.gmra.mrb[72].mxu0 %v932_v57  ;;  %1438 = vmatmul.mubr.bf16.gmra.mrb[88].mxu1 %v918_v58  ;;  %v806_v0 = vmax.f32 %v652_v1, 0.0 }
 0x157   :  { %v837_v15 = vmax.f32 %v501_v4, 0.0  ;;  %v505_v18 = vadd.f32 %v504_v11, %v2623_v24  ;;  %v658_v22 = vadd.f32 %v657_v12, %v2675_v13  ;;  %v807_v27 = vmax.f32 %v654_v5, 0.0 }
 0x158   :  { %v840_v25 = vmax.f32 %v503_v9, 0.0  ;;  %v810_v26 = vmax.f32 %v656_v20, 0.0 }
 0x159   :  { %v841_v28 = vmax.f32 %v505_v18, 0.0  ;;  %v811_v29 = vmax.f32 %v658_v22, 0.0 }
 0x15a   :  { %v936_v30 = vpack.c.bf16 %v840_v25, %v836_v8  ;;  %v922_v19 = vpack.c.bf16 %v810_v26, %v806_v0 }
 0x15b   :  { %v937_v31 = vpack.c.bf16 %v841_v28, %v837_v15  ;;  %v923_v32 = vpack.c.bf16 %v811_v29, %v807_v27  ;;  %v508_v33 = vpop.f32.mrb[32].mxu0  ;;  %v661_v34 = vpop.f32.mrb[32].mxu1 }
 0x15c   :  { %v509_v35 = vadd.f32 %v508_v33, %v2620_v23  ;;  %v662_v36 = vadd.f32 %v661_v34, %v2672_v10  ;;  %v510_v37 = vpop.f32.mrb[33].mxu0  ;;  %v663_v38 = vpop.f32.mrb[33].mxu1 }
 0x15d   :  { %v511_v39 = vadd.f32 %v510_v37, %v2623_v24  ;;  %v664_v40 = vadd.f32 %v663_v38, %v2675_v13  ;;  %v512_v41 = vpop.f32.mrb[34].mxu0  ;;  %v665_v42 = vpop.f32.mrb[34].mxu1  ;;  %1316 = vmatprep.mubr.bf16.mxu0 %v937_v31  ;;  %1445 = vmatprep.mubr.bf16.mxu1 %v923_v32 }
 0x15e   :  { %v844_v43 = vmax.f32 %v509_v35, 0.0  ;;  %v513_v44 = vadd.f32 %v512_v41, %v2620_v23  ;;  %v666_v46 = vadd.f32 %v665_v42, %v2672_v10  ;;  %v514_v48 = vpop.f32.mrb[35].mxu0  ;;  %v667_v50 = vpop.f32.mrb[35].mxu1  ;;  %1317 = vmatmul.mubr.bf16.gmra.mrb[76].mxu0 %v936_v30  ;;  %1446 = vmatmul.mubr.bf16.gmra.mrb[92].mxu1 %v922_v19  ;;  %v814_v55 = vmax.f32 %v662_v36, 0.0 }
 0x15f   :  { %v845_v52 = vmax.f32 %v511_v39, 0.0  ;;  %v515_v53 = vadd.f32 %v514_v48, %v2623_v24  ;;  %v668_v54 = vadd.f32 %v667_v50, %v2675_v13  ;;  %v815_v58 = vmax.f32 %v664_v40, 0.0 }
 0x160   :  { %v848_v56 = vmax.f32 %v513_v44, 0.0  ;;  %v818_v57 = vmax.f32 %v666_v46, 0.0 }
 0x161   :  { %v849_v59 = vmax.f32 %v515_v53, 0.0  ;;  %v819_v60 = vmax.f32 %v668_v54, 0.0 }
 0x162   :  { %v940_v61 = vpack.c.bf16 %v848_v56, %v844_v43  ;;  %v926_v62 = vpack.c.bf16 %v818_v57, %v814_v55 }
 0x163   :  { %v941_v63 = vpack.c.bf16 %v849_v59, %v845_v52  ;;  %v927_v1 = vpack.c.bf16 %v819_v60, %v815_v58  ;;  %v518_v2 = vpop.f32.mrb[36].mxu0  ;;  %v671_v3 = vpop.f32.mrb[36].mxu1 }
 0x164   :  { %v519_v4 = vadd.f32 %v518_v2, %v2620_v23  ;;  %v672_v5 = vadd.f32 %v671_v3, %v2672_v10  ;;  %v520_v6 = vpop.f32.mrb[37].mxu0  ;;  %v673_v7 = vpop.f32.mrb[37].mxu1 }
 0x165   :  { %v521_v8 = vadd.f32 %v520_v6, %v2623_v24  ;;  %v674_v9 = vadd.f32 %v673_v7, %v2675_v13  ;;  %v522_v20 = vpop.f32.mrb[38].mxu0  ;;  %v675_v11 = vpop.f32.mrb[38].mxu1  ;;  %1324 = vmatprep.mubr.bf16.mxu0 %v941_v63  ;;  %1453 = vmatprep.mubr.bf16.mxu1 %v927_v1 }
 0x166   :  { %v852_v12 = vmax.f32 %v519_v4, 0.0  ;;  %v523_v15 = vadd.f32 %v522_v20, %v2620_v23  ;;  %v676_v18 = vadd.f32 %v675_v11, %v2672_v10  ;;  %v524_v22 = vpop.f32.mrb[39].mxu0  ;;  %v677_v0 = vpop.f32.mrb[39].mxu1  ;;  %1325 = vmatmul.mubr.bf16.gmra.mrb[80].mxu0 %v940_v61  ;;  %1454 = vmatmul.mubr.bf16.gmra.mrb[96].mxu1 %v926_v62  ;;  %v822_v28 = vmax.f32 %v672_v5, 0.0 }
 0x167   :  { %v853_v25 = vmax.f32 %v521_v8, 0.0  ;;  %v525_v26 = vadd.f32 %v524_v22, %v2623_v24  ;;  %v678_v27 = vadd.f32 %v677_v0, %v2675_v13  ;;  %v823_v19 = vmax.f32 %v674_v9, 0.0 }
 0x168   :  { %v856_v29 = vmax.f32 %v523_v15, 0.0  ;;  %v826_v30 = vmax.f32 %v676_v18, 0.0 }
 0x169   :  { %v857_v31 = vmax.f32 %v525_v26, 0.0  ;;  %v827_v32 = vmax.f32 %v678_v27, 0.0 }
 0x16a   :  { %v944_v33 = vpack.c.bf16 %v856_v29, %v852_v12  ;;  %v930_v34 = vpack.c.bf16 %v826_v30, %v822_v28 }
 0x16b   :  { %v945_v35 = vpack.c.bf16 %v857_v31, %v853_v25  ;;  %v931_v36 = vpack.c.bf16 %v827_v32, %v823_v19  ;;  %v528_v37 = vpop.f32.mrb[40].mxu0  ;;  %v681_v38 = vpop.f32.mrb[40].mxu1 }
 0x16c   :  { %v529_v39 = vadd.f32 %v528_v37, %v2620_v23  ;;  %v682_v40 = vadd.f32 %v681_v38, %v2672_v10  ;;  %v530_v41 = vpop.f32.mrb[41].mxu0  ;;  %v683_v42 = vpop.f32.mrb[41].mxu1 }
 0x16d   :  { %v531_v43 = vadd.f32 %v530_v41, %v2623_v24  ;;  %v684_v44 = vadd.f32 %v683_v42, %v2675_v13  ;;  %v532_v46 = vpop.f32.mrb[42].mxu0  ;;  %v685_v48 = vpop.f32.mrb[42].mxu1  ;;  %1332 = vmatprep.mubr.bf16.mxu0 %v945_v35  ;;  %1461 = vmatprep.mubr.bf16.mxu1 %v931_v36  ;;  %v2375_v41 = vld [vmem:[%s3012_s4 + $0x18] sm:$0xff]  }
 0x16e   :  { %v860_v50 = vmax.f32 %v529_v39, 0.0  ;;  %v533_v52 = vadd.f32 %v532_v46, %v2620_v23  ;;  %v686_v53 = vadd.f32 %v685_v48, %v2672_v10  ;;  %v534_v54 = vpop.f32.mrb[43].mxu0  ;;  %v687_v55 = vpop.f32.mrb[43].mxu1  ;;  %1333 = vmatmul.mubr.bf16.gmra.mrb[84].mxu0 %v944_v33  ;;  %1462 = vmatmul.mubr.bf16.gmra.mrb[100].mxu1 %v930_v34  ;;  %v830_v59 = vmax.f32 %v682_v40, 0.0 }
 0x16f   :  { %v861_v56 = vmax.f32 %v531_v43, 0.0  ;;  %v535_v57 = vadd.f32 %v534_v54, %v2623_v24  ;;  %v688_v58 = vadd.f32 %v687_v55, %v2675_v13  ;;  %v831_v62 = vmax.f32 %v684_v44, 0.0  ;;  %2211 = vmatprep.subr.bf16.mxu0 %v2375_v41 }
 0x170   :  { %v864_v60 = vmax.f32 %v533_v52, 0.0  ;;  %v834_v61 = vmax.f32 %v686_v53, 0.0  ;;  %2212 = vmatpush3.bf16.msra.mxu0 %v2375_v41 }
 0x171   :  { %v865_v63 = vmax.f32 %v535_v57, 0.0  ;;  %v835_v1 = vmax.f32 %v688_v58, 0.0 }
 0x172   :  { %v948_v2 = vpack.c.bf16 %v864_v60, %v860_v50  ;;  %v934_v3 = vpack.c.bf16 %v834_v61, %v830_v59 }
 0x173   :  { %v949_v4 = vpack.c.bf16 %v865_v63, %v861_v56  ;;  %v935_v5 = vpack.c.bf16 %v835_v1, %v831_v62  ;;  %v538_v6 = vpop.f32.mrb[44].mxu0  ;;  %v691_v7 = vpop.f32.mrb[44].mxu1 }
 0x174   :  { %v539_v8 = vadd.f32 %v538_v6, %v2620_v23  ;;  %v692_v9 = vadd.f32 %v691_v7, %v2672_v10  ;;  %v540_v20 = vpop.f32.mrb[45].mxu0  ;;  %v693_v11 = vpop.f32.mrb[45].mxu1 }
 0x175   :  { %v541_v12 = vadd.f32 %v540_v20, %v2623_v24  ;;  %v694_v15 = vadd.f32 %v693_v11, %v2675_v13  ;;  %v542_v18 = vpop.f32.mrb[46].mxu0  ;;  %v695_v22 = vpop.f32.mrb[46].mxu1  ;;  %1340 = vmatprep.mubr.bf16.mxu0 %v949_v4  ;;  %1469 = vmatprep.mubr.bf16.mxu1 %v935_v5 }
 0x176   :  { %v868_v0 = vmax.f32 %v539_v8, 0.0  ;;  %v543_v25 = vadd.f32 %v542_v18, %v2620_v23  ;;  %v696_v26 = vadd.f32 %v695_v22, %v2672_v10  ;;  %v544_v27 = vpop.f32.mrb[47].mxu0  ;;  %v697_v28 = vpop.f32.mrb[47].mxu1  ;;  %1341 = vmatmul.mubr.bf16.gmra.mrb[88].mxu0 %v948_v2  ;;  %1470 = vmatmul.mubr.bf16.gmra.mrb[104].mxu1 %v934_v3  ;;  %v838_v31 = vmax.f32 %v692_v9, 0.0 }
 0x177   :  { %v869_v29 = vmax.f32 %v541_v12, 0.0  ;;  %v545_v30 = vadd.f32 %v544_v27, %v2623_v24  ;;  %v698_v19 = vadd.f32 %v697_v28, %v2675_v13  ;;  %v839_v34 = vmax.f32 %v694_v15, 0.0 }
 0x178   :  { %v872_v32 = vmax.f32 %v543_v25, 0.0  ;;  %v842_v33 = vmax.f32 %v696_v26, 0.0 }
 0x179   :  { %v873_v35 = vmax.f32 %v545_v30, 0.0  ;;  %v843_v36 = vmax.f32 %v698_v19, 0.0 }
 0x17a   :  { %v952_v37 = vpack.c.bf16 %v872_v32, %v868_v0  ;;  %v938_v38 = vpack.c.bf16 %v842_v33, %v838_v31 }
 0x17b   :  { %v953_v23 = vpack.c.bf16 %v873_v35, %v869_v29  ;;  %v939_v39 = vpack.c.bf16 %v843_v36, %v839_v34  ;;  %v701_v40 = vpop.f32.mrb[48].mxu1 }
 0x17c   :  { %v702_v42 = vadd.f32 %v701_v40, %v2672_v10  ;;  %v703_v24 = vpop.f32.mrb[49].mxu1 }
 0x17d   :  { %v704_v43 = vadd.f32 %v703_v24, %v2675_v13  ;;  %v705_v44 = vpop.f32.mrb[50].mxu1  ;;  %1348 = vmatprep.mubr.bf16.mxu0 %v953_v23  ;;  %1477 = vmatprep.mubr.bf16.mxu1 %v939_v39  ;;  %v2376_v39 = vld [vmem:[%s3012_s4 + $0x20] sm:$0xff]  }
 0x17e   :  { %v706_v46 = vadd.f32 %v705_v44, %v2672_v10  ;;  %v707_v48 = vpop.f32.mrb[51].mxu1  ;;  %1349 = vmatmul.mubr.bf16.gmra.mrb[92].mxu0 %v952_v37  ;;  %1478 = vmatmul.mubr.bf16.gmra.mrb[108].mxu1 %v938_v38  ;;  %v846_v52 = vmax.f32 %v702_v42, 0.0  ;;  %v2377_v44 = vld [vmem:[%s3012_s4 + $0x28] sm:$0xff]  }
 0x17f   :  { %v708_v50 = vadd.f32 %v707_v48, %v2675_v13  ;;  %1356 = vmatprep.mubr.bf16.mxu0 %v2635_v51  ;;  %v847_v54 = vmax.f32 %v704_v43, 0.0  ;;  %2213 = vmatprep.subr.bf16.mxu0 %v2376_v39 }
 0x180   :  { %v850_v53 = vmax.f32 %v706_v46, 0.0  ;;  %2214 = vmatpush3.bf16.msra.mxu0 %v2376_v39 }
 0x181   :  { %v851_v55 = vmax.f32 %v708_v50, 0.0  ;;  %2215 = vmatprep.subr.bf16.mxu0 %v2377_v44 }
 0x182   :  { %v942_v56 = vpack.c.bf16 %v850_v53, %v846_v52 }
 0x183   :  { %v943_v57 = vpack.c.bf16 %v851_v55, %v847_v54  ;;  %v711_v58 = vpop.f32.mrb[52].mxu1 }
 0x184   :  { %v712_v59 = vadd.f32 %v711_v58, %v2672_v10  ;;  %v713_v60 = vpop.f32.mrb[53].mxu1  ;;  %2216 = vmatpush3.bf16.msra.mxu0 %v2377_v44 }
 0x185   :  { %v714_v61 = vadd.f32 %v713_v60, %v2675_v13  ;;  %v715_v62 = vpop.f32.mrb[54].mxu1  ;;  %1485 = vmatprep.mubr.bf16.mxu1 %v943_v57 }
 0x186   :  { %v716_v63 = vadd.f32 %v715_v62, %v2672_v10  ;;  %v717_v1 = vpop.f32.mrb[55].mxu1  ;;  %1357 = vmatmul.mubr.bf16.gmra.mrb[96].mxu0 %v2633_v49  ;;  %1486 = vmatmul.mubr.bf16.gmra.mrb[112].mxu1 %v942_v56  ;;  %v854_v2 = vmax.f32 %v712_v59, 0.0 }
 0x187   :  { %v718_v51 = vadd.f32 %v717_v1, %v2675_v13  ;;  %1364 = vmatprep.mubr.bf16.mxu0 %v2647_v16  ;;  %v855_v4 = vmax.f32 %v714_v61, 0.0 }
 0x188   :  { %v858_v3 = vmax.f32 %v716_v63, 0.0  ;;  %v2379_v63 = vld [vmem:[%s3012_s4 + $0x38] sm:$0xff]  }
 0x189   :  { %v859_v5 = vmax.f32 %v718_v51, 0.0 }
 0x18a   :  { %v946_v6 = vpack.c.bf16 %v858_v3, %v854_v2 }
 0x18b   :  { %v947_v7 = vpack.c.bf16 %v859_v5, %v855_v4  ;;  %v721_v8 = vpop.f32.mrb[56].mxu1 }
 0x18c   :  { %v722_v9 = vadd.f32 %v721_v8, %v2672_v10  ;;  %v723_v20 = vpop.f32.mrb[57].mxu1 }
 0x18d   :  { %v724_v11 = vadd.f32 %v723_v20, %v2675_v13  ;;  %v725_v12 = vpop.f32.mrb[58].mxu1  ;;  %1493 = vmatprep.mubr.bf16.mxu1 %v947_v7 }
 0x18e   :  { %v726_v49 = vadd.f32 %v725_v12, %v2672_v10  ;;  %v727_v15 = vpop.f32.mrb[59].mxu1  ;;  %1365 = vmatmul.mubr.bf16.gmra.mrb[100].mxu0 %v2645_v14  ;;  %1494 = vmatmul.mubr.bf16.gmra.mrb[116].mxu1 %v946_v6  ;;  %v862_v18 = vmax.f32 %v722_v9, 0.0 }
 0x18f   :  { %v728_v16 = vadd.f32 %v727_v15, %v2675_v13  ;;  %1372 = vmatprep.mubr.bf16.mxu0 %v2659_v47  ;;  %v863_v0 = vmax.f32 %v724_v11, 0.0 }
 0x190   :  { %v866_v22 = vmax.f32 %v726_v49, 0.0 }
 0x191   :  { %v867_v25 = vmax.f32 %v728_v16, 0.0 }
 0x192   :  { %v950_v26 = vpack.c.bf16 %v866_v22, %v862_v18 }
 0x193   :  { %v951_v27 = vpack.c.bf16 %v867_v25, %v863_v0  ;;  %v731_v28 = vpop.f32.mrb[60].mxu1 }
 0x194   :  { %v732_v29 = vadd.f32 %v731_v28, %v2672_v10  ;;  %v733_v30 = vpop.f32.mrb[61].mxu1 }
 0x195   :  { %v734_v19 = vadd.f32 %v733_v30, %v2675_v13  ;;  %v735_v31 = vpop.f32.mrb[62].mxu1  ;;  %1501 = vmatprep.mubr.bf16.mxu1 %v951_v27 }
 0x196   :  { %v736_v14 = vadd.f32 %v735_v31, %v2672_v10  ;;  %v737_v32 = vpop.f32.mrb[63].mxu1  ;;  %1373 = vmatmul.mubr.bf16.gmra.mrb[104].mxu0 %v2657_v45  ;;  %1502 = vmatmul.mubr.bf16.gmra.mrb[120].mxu1 %v950_v26  ;;  %v870_v33 = vmax.f32 %v732_v29, 0.0 }
 0x197   :  { %v738_v47 = vadd.f32 %v737_v32, %v2675_v13  ;;  %1380 = vmatprep.mubr.bf16.mxu0 %v2679_v21  ;;  %v871_v35 = vmax.f32 %v734_v19, 0.0 }
 0x198   :  { %v874_v34 = vmax.f32 %v736_v14, 0.0 }
 0x199   :  { %v875_v36 = vmax.f32 %v738_v47, 0.0 }
 0x19a   :  { %v954_v37 = vpack.c.bf16 %v874_v34, %v870_v33 }
 0x19b   :  { %v955_v38 = vpack.c.bf16 %v875_v36, %v871_v35  ;;  %v741_v23 = vpop.f32.mrb[64].mxu1 }
 0x19c   :  { %v742_v40 = vadd.f32 %v741_v23, %v2672_v10  ;;  %v743_v41 = vpop.f32.mrb[65].mxu1 }
 0x19d   :  { %v744_v45 = vadd.f32 %v743_v41, %v2675_v13  ;;  %v745_v42 = vpop.f32.mrb[66].mxu1  ;;  %1509 = vmatprep.mubr.bf16.mxu1 %v955_v38 }
 0x19e   :  { %v746_v21 = vadd.f32 %v745_v42, %v2672_v10  ;;  %v747_v24 = vpop.f32.mrb[67].mxu1  ;;  %1381 = vmatmul.mubr.bf16.gmra.mrb[108].mxu0 %v2677_v17  ;;  %1510 = vmatmul.mubr.bf16.gmra.mrb[124].mxu1 %v954_v37  ;;  %v878_v46 = vmax.f32 %v742_v40, 0.0  ;;  %v2378_v17 = vld [vmem:[%s3012_s4 + $0x30] sm:$0xff]  }
 0x19f   :  { %v748_v43 = vadd.f32 %v747_v24, %v2675_v13  ;;  %v879_v50 = vmax.f32 %v744_v45, 0.0  ;;  %2217 = vmatprep.subr.bf16.mxu0 %v2378_v17 }
 0x1a0   :  { %v882_v48 = vmax.f32 %v746_v21, 0.0  ;;  %2218 = vmatpush3.bf16.msra.mxu0 %v2378_v17 }
 0x1a1   :  { %v883_v52 = vmax.f32 %v748_v43, 0.0  ;;  %2219 = vmatprep.subr.bf16.mxu0 %v2379_v63 }
 0x1a2   :  { %v958_v53 = vpack.c.bf16 %v882_v48, %v878_v46 }
 0x1a3   :  { %v959_v54 = vpack.c.bf16 %v883_v52, %v879_v50  ;;  %v751_v55 = vpop.f32.mrb[68].mxu1 }
 0x1a4   :  { %v752_v56 = vadd.f32 %v751_v55, %v2672_v10  ;;  %v753_v57 = vpop.f32.mrb[69].mxu1  ;;  %2220 = vmatpush3.bf16.msra.mxu0 %v2379_v63 }
 0x1a5   :  { %v754_v58 = vadd.f32 %v753_v57, %v2675_v13  ;;  %v755_v59 = vpop.f32.mrb[70].mxu1  ;;  %1517 = vmatprep.mubr.bf16.mxu1 %v959_v54 }
 0x1a6   :  { %v756_v60 = vadd.f32 %v755_v59, %v2672_v10  ;;  %v757_v61 = vpop.f32.mrb[71].mxu1  ;;  %1518 = vmatmul.mubr.bf16.gmra.mrb[128].mxu1 %v958_v53  ;;  %v886_v1 = vmax.f32 %v752_v56, 0.0 }
 0x1a7   :  { %v758_v62 = vadd.f32 %v757_v61, %v2675_v13  ;;  %v887_v2 = vmax.f32 %v754_v58, 0.0 }
 0x1a8   :  { %v890_v51 = vmax.f32 %v756_v60, 0.0 }
 0x1a9   :  { %v891_v3 = vmax.f32 %v758_v62, 0.0 }
 0x1aa   :  { %v962_v4 = vpack.c.bf16 %v890_v51, %v886_v1 }
 0x1ab   :  { %v963_v5 = vpack.c.bf16 %v891_v3, %v887_v2  ;;  %v761_v6 = vpop.f32.mrb[72].mxu1 }
 0x1ac   :  { %v762_v7 = vadd.f32 %v761_v6, %v2672_v10  ;;  %v763_v8 = vpop.f32.mrb[73].mxu1 }
 0x1ad   :  { %v764_v9 = vadd.f32 %v763_v8, %v2675_v13  ;;  %v765_v20 = vpop.f32.mrb[74].mxu1  ;;  %1525 = vmatprep.mubr.bf16.mxu1 %v963_v5 }
 0x1ae   :  { %v766_v11 = vadd.f32 %v765_v20, %v2672_v10  ;;  %v767_v12 = vpop.f32.mrb[75].mxu1  ;;  %1526 = vmatmul.mubr.bf16.gmra.mrb[132].mxu1 %v962_v4  ;;  %v894_v15 = vmax.f32 %v762_v7, 0.0 }
 0x1af   :  { %v768_v49 = vadd.f32 %v767_v12, %v2675_v13  ;;  %v895_v18 = vmax.f32 %v764_v9, 0.0 }
 0x1b0   :  { %v898_v16 = vmax.f32 %v766_v11, 0.0 }
 0x1b1   :  { %v899_v22 = vmax.f32 %v768_v49, 0.0 }
 0x1b2   :  { %v966_v0 = vpack.c.bf16 %v898_v16, %v894_v15 }
 0x1b3   :  { %v967_v25 = vpack.c.bf16 %v899_v22, %v895_v18  ;;  %v771_v26 = vpop.f32.mrb[76].mxu1 }
 0x1b4   :  { %v772_v27 = vadd.f32 %v771_v26, %v2672_v10  ;;  %v773_v28 = vpop.f32.mrb[77].mxu1 }
 0x1b5   :  { %v774_v29 = vadd.f32 %v773_v28, %v2675_v13  ;;  %v775_v30 = vpop.f32.mrb[78].mxu1  ;;  %1533 = vmatprep.mubr.bf16.mxu1 %v967_v25 }
 0x1b6   :  { %v776_v19 = vadd.f32 %v775_v30, %v2672_v10  ;;  %v777_v31 = vpop.f32.mrb[79].mxu1  ;;  %1534 = vmatmul.mubr.bf16.gmra.mrb[136].mxu1 %v966_v0  ;;  %v902_v32 = vmax.f32 %v772_v27, 0.0 }
 0x1b7   :  { %v778_v14 = vadd.f32 %v777_v31, %v2675_v13  ;;  %v903_v33 = vmax.f32 %v774_v29, 0.0 }
 0x1b8   :  { %v906_v47 = vmax.f32 %v776_v19, 0.0 }
 0x1b9   :  { %v907_v34 = vmax.f32 %v778_v14, 0.0 }
 0x1ba   :  { %v970_v35 = vpack.c.bf16 %v906_v47, %v902_v32 }
 0x1bb   :  { %v971_v36 = vpack.c.bf16 %v907_v34, %v903_v33 }
 0x1bd   :  { %1541 = vmatprep.mubr.bf16.mxu1 %v971_v36 }
 0x1be   :  { %1542 = vmatmul.mubr.bf16.gmra.mrb[140].mxu1 %v970_v35 }
 0x1f9   :  { %v1973_v37 = vpop.f32.mrb[48].mxu0 }
 0x1fa   :  { %v1974_v38 = vpop.f32.mrb[49].mxu0 }
 0x1fb   :  { %v1975_v23 = vadd.f32 %v1974_v38, %v1973_v37  ;;  %v1976_v39 = vpop.f32.mrb[50].mxu0 }
 0x1fc   :  { %v1977_v40 = vpop.f32.mrb[51].mxu0 }
 0x1fd   :  { %v1978_v41 = vadd.f32 %v1977_v40, %v1976_v39 }
 0x201   :  { %v1979_v45 = vpop.f32.mrb[52].mxu0 }
 0x202   :  { %v1980_v10 = vpop.f32.mrb[53].mxu0 }
 0x203   :  { %v1981_v42 = vadd.f32 %v1980_v10, %v1979_v45  ;;  %v1982_v21 = vpop.f32.mrb[54].mxu0 }
 0x204   :  { %v1983_v24 = vpop.f32.mrb[55].mxu0 }
 0x205   :  { %v1984_v13 = vadd.f32 %v1983_v24, %v1982_v21 }
 0x209   :  { %v1985_v43 = vpop.f32.mrb[56].mxu0 }
 0x20a   :  { %v1986_v44 = vpop.f32.mrb[57].mxu0 }
 0x20b   :  { %v1987_v46 = vadd.f32 %v1986_v44, %v1985_v43  ;;  %v1988_v48 = vpop.f32.mrb[58].mxu0 }
 0x20c   :  { %v1989_v50 = vpop.f32.mrb[59].mxu0 }
 0x20d   :  { %v1990_v52 = vadd.f32 %v1989_v50, %v1988_v48 }
 0x211   :  { %v1991_v53 = vpop.f32.mrb[60].mxu0 }
 0x212   :  { %v1992_v54 = vpop.f32.mrb[61].mxu0 }
 0x213   :  { %v2809_v55 = vadd.f32 %v1992_v54, %v1991_v53  ;;  %v1994_v17 = vpop.f32.mrb[62].mxu0 }
 0x214   :  { %v1995_v56 = vpop.f32.mrb[63].mxu0 }
 0x215   :  { %v2811_v57 = vadd.f32 %v1995_v56, %v1994_v17 }
 0x219   :  { %v2085_v58 = vpop.f32.mrb[80].mxu1  ;;  %v1997_v59 = vpop.f32.mrb[64].mxu0 }
 0x21a   :  { %v2086_v60 = vpop.f32.mrb[81].mxu1  ;;  %v1998_v61 = vpop.f32.mrb[65].mxu0 }
 0x21b   :  { %v2087_v62 = vadd.f32 %v2086_v60, %v2085_v58  ;;  %v2088_v63 = vpop.f32.mrb[82].mxu1  ;;  %v2813_v1 = vadd.f32 %v1998_v61, %v1997_v59  ;;  %v2000_v51 = vpop.f32.mrb[66].mxu0 }
 0x21c   :  { %v2089_v2 = vpop.f32.mrb[83].mxu1  ;;  %v2001_v3 = vpop.f32.mrb[67].mxu0 }
 0x21d   :  { %v1424_v4 = vadd.f32 %v2087_v62, %v1975_v23  ;;  %v2090_v5 = vadd.f32 %v2089_v2, %v2088_v63  ;;  %v2815_v6 = vadd.f32 %v2001_v3, %v2000_v51 }
 0x21f   :  { %v1427_v7 = vadd.f32 %v2090_v5, %v1978_v41  ;;  %v1550_v8 = vmax.f32 %v1424_v4, 0.0 }
 0x221   :  { %v1551_v9 = vmax.f32 %v1427_v7, 0.0  ;;  %v2091_v20 = vpop.f32.mrb[84].mxu1  ;;  %v2003_v11 = vpop.f32.mrb[68].mxu0 }
 0x222   :  { %v2092_v12 = vpop.f32.mrb[85].mxu1  ;;  %v2004_v49 = vpop.f32.mrb[69].mxu0 }
 0x223   :  { %v2093_v15 = vadd.f32 %v2092_v12, %v2091_v20  ;;  %v2094_v16 = vpop.f32.mrb[86].mxu1  ;;  %v1582_v18 = vpack.c.bf16 %v1551_v9, %v1550_v8  ;;  %v2817_v22 = vadd.f32 %v2004_v49, %v2003_v11  ;;  %v2006_v0 = vpop.f32.mrb[70].mxu0 }
 0x224   :  { %v2095_v25 = vpop.f32.mrb[87].mxu1  ;;  %v2007_v26 = vpop.f32.mrb[71].mxu0 }
 0x225   :  { %v1432_v27 = vadd.f32 %v2093_v15, %v1981_v42  ;;  %v2096_v28 = vadd.f32 %v2095_v25, %v2094_v16  ;;  %2221 = vmatprep.mubr.bf16.mxu0 %v1582_v18  ;;  %v2819_v29 = vadd.f32 %v2007_v26, %v2006_v0 }
 0x227   :  { %v1435_v30 = vadd.f32 %v2096_v28, %v1984_v13  ;;  %v1552_v19 = vmax.f32 %v1432_v27, 0.0 }
 0x229   :  { %v1553_v31 = vmax.f32 %v1435_v30, 0.0  ;;  %v2097_v14 = vpop.f32.mrb[88].mxu1  ;;  %v2009_v32 = vpop.f32.mrb[72].mxu0 }
 0x22a   :  { %v2098_v47 = vpop.f32.mrb[89].mxu1  ;;  %v2010_v33 = vpop.f32.mrb[73].mxu0 }
 0x22b   :  { %v1583_v34 = vpack.c.bf16 %v1553_v31, %v1552_v19  ;;  %v2099_v35 = vadd.f32 %v2098_v47, %v2097_v14  ;;  %v2100_v36 = vpop.f32.mrb[90].mxu1  ;;  %v2821_v37 = vadd.f32 %v2010_v33, %v2009_v32  ;;  %v2012_v38 = vpop.f32.mrb[74].mxu0 }
 0x22c   :  { %v2101_v23 = vpop.f32.mrb[91].mxu1  ;;  %v2013_v39 = vpop.f32.mrb[75].mxu0 }
 0x22d   :  { %v1440_v40 = vadd.f32 %v2099_v35, %v1987_v46  ;;  %v2102_v41 = vadd.f32 %v2101_v23, %v2100_v36  ;;  %2222 = vmatmul.mubr.bf16.vlgmr.msra.gmra.mrb[112].mxu0 %v1583_v34  ;;  %v2823_v45 = vadd.f32 %v2013_v39, %v2012_v38 }
 0x22f   :  { %v1443_v10 = vadd.f32 %v2102_v41, %v1990_v52  ;;  %v1554_v42 = vmax.f32 %v1440_v40, 0.0 }
 0x231   :  { %v1555_v21 = vmax.f32 %v1443_v10, 0.0  ;;  %v2103_v24 = vpop.f32.mrb[92].mxu1  ;;  %v2015_v13 = vpop.f32.mrb[76].mxu0 }
 0x232   :  { %v2104_v43 = vpop.f32.mrb[93].mxu1  ;;  %v2016_v44 = vpop.f32.mrb[77].mxu0 }
 0x233   :  { %v2105_v48 = vadd.f32 %v2104_v43, %v2103_v24  ;;  %v2106_v50 = vpop.f32.mrb[94].mxu1  ;;  %v1584_v53 = vpack.c.bf16 %v1555_v21, %v1554_v42  ;;  %v2825_v54 = vadd.f32 %v2016_v44, %v2015_v13  ;;  %v2018_v17 = vpop.f32.mrb[78].mxu0 }
 0x234   :  { %v2107_v56 = vpop.f32.mrb[95].mxu1  ;;  %v2019_v58 = vpop.f32.mrb[79].mxu0 }
 0x235   :  { %v1448_v46 = vadd.f32 %v2105_v48, %v2809_v55  ;;  %v2108_v59 = vadd.f32 %v2107_v56, %v2106_v50  ;;  %2225 = vmatprep.mubr.bf16.mxu0 %v1584_v53  ;;  %v2828_v60 = vadd.f32 %v2019_v58, %v2018_v17 }
 0x237   :  { %v1451_v52 = vadd.f32 %v2108_v59, %v2811_v57  ;;  %v1556_v61 = vmax.f32 %v1448_v46, 0.0 }
 0x239   :  { %v1557_v62 = vmax.f32 %v1451_v52, 0.0  ;;  %v2109_v63 = vpop.f32.mrb[96].mxu1  ;;  %v2021_v51 = vpop.f32.mrb[80].mxu0 }
 0x23a   :  { %v2110_v2 = vpop.f32.mrb[97].mxu1  ;;  %v2022_v3 = vpop.f32.mrb[81].mxu0 }
 0x23b   :  { %v2111_v4 = vadd.f32 %v2110_v2, %v2109_v63  ;;  %v2112_v5 = vpop.f32.mrb[98].mxu1  ;;  %v1585_v7 = vpack.c.bf16 %v1557_v62, %v1556_v61  ;;  %v2831_v8 = vadd.f32 %v2022_v3, %v2021_v51  ;;  %v2024_v9 = vpop.f32.mrb[82].mxu0 }
 0x23c   :  { %v2113_v20 = vpop.f32.mrb[99].mxu1  ;;  %v2025_v55 = vpop.f32.mrb[83].mxu0 }
 0x23d   :  { %v1456_v11 = vadd.f32 %v2111_v4, %v2813_v1  ;;  %v2114_v12 = vadd.f32 %v2113_v20, %v2112_v5  ;;  %2226 = vmatmul.mubr.bf16.gmra.mrb[116].mxu0 %v1585_v7  ;;  %v2834_v49 = vadd.f32 %v2025_v55, %v2024_v9 }
 0x23f   :  { %v1459_v57 = vadd.f32 %v2114_v12, %v2815_v6  ;;  %v1558_v15 = vmax.f32 %v1456_v11, 0.0 }
 0x241   :  { %v1559_v16 = vmax.f32 %v1459_v57, 0.0  ;;  %v2115_v18 = vpop.f32.mrb[100].mxu1  ;;  %v2027_v0 = vpop.f32.mrb[84].mxu0 }
 0x242   :  { %v2116_v25 = vpop.f32.mrb[101].mxu1  ;;  %v2028_v26 = vpop.f32.mrb[85].mxu0 }
 0x243   :  { %v2117_v27 = vadd.f32 %v2116_v25, %v2115_v18  ;;  %v2118_v28 = vpop.f32.mrb[102].mxu1  ;;  %v1586_v30 = vpack.c.bf16 %v1559_v16, %v1558_v15  ;;  %v2837_v19 = vadd.f32 %v2028_v26, %v2027_v0  ;;  %v2030_v31 = vpop.f32.mrb[86].mxu0 }
 0x244   :  { %v2119_v14 = vpop.f32.mrb[103].mxu1  ;;  %v2031_v1 = vpop.f32.mrb[87].mxu0 }
 0x245   :  { %v1464_v32 = vadd.f32 %v2117_v27, %v2817_v22  ;;  %v2120_v47 = vadd.f32 %v2119_v14, %v2118_v28  ;;  %2229 = vmatprep.mubr.bf16.mxu0 %v1586_v30  ;;  %v2840_v33 = vadd.f32 %v2031_v1, %v2030_v31 }
 0x247   :  { %v1467_v6 = vadd.f32 %v2120_v47, %v2819_v29  ;;  %v1560_v34 = vmax.f32 %v1464_v32, 0.0 }
 0x249   :  { %v1561_v35 = vmax.f32 %v1467_v6, 0.0  ;;  %v2121_v36 = vpop.f32.mrb[104].mxu1  ;;  %v2033_v38 = vpop.f32.mrb[88].mxu0 }
 0x24a   :  { %v2122_v23 = vpop.f32.mrb[105].mxu1  ;;  %v2034_v39 = vpop.f32.mrb[89].mxu0 }
 0x24b   :  { %v2123_v40 = vadd.f32 %v2122_v23, %v2121_v36  ;;  %v2124_v41 = vpop.f32.mrb[106].mxu1  ;;  %v1587_v10 = vpack.c.bf16 %v1561_v35, %v1560_v34  ;;  %v2843_v42 = vadd.f32 %v2034_v39, %v2033_v38  ;;  %v2036_v21 = vpop.f32.mrb[90].mxu0 }
 0x24c   :  { %v2125_v24 = vpop.f32.mrb[107].mxu1  ;;  %v2037_v22 = vpop.f32.mrb[91].mxu0 }
 0x24d   :  { %v1472_v13 = vadd.f32 %v2123_v40, %v2821_v37  ;;  %v2126_v43 = vadd.f32 %v2125_v24, %v2124_v41  ;;  %2230 = vmatmul.mubr.bf16.gmra.mrb[120].mxu0 %v1587_v10  ;;  %v2846_v44 = vadd.f32 %v2037_v22, %v2036_v21 }
 0x24f   :  { %v1475_v29 = vadd.f32 %v2126_v43, %v2823_v45  ;;  %v1562_v48 = vmax.f32 %v1472_v13, 0.0 }
 0x251   :  { %v1563_v50 = vmax.f32 %v1475_v29, 0.0  ;;  %v2127_v53 = vpop.f32.mrb[108].mxu1  ;;  %v2039_v17 = vpop.f32.mrb[92].mxu0 }
 0x252   :  { %v2128_v56 = vpop.f32.mrb[109].mxu1  ;;  %v2040_v58 = vpop.f32.mrb[93].mxu0 }
 0x253   :  { %v2129_v46 = vadd.f32 %v2128_v56, %v2127_v53  ;;  %v2130_v59 = vpop.f32.mrb[110].mxu1  ;;  %v1588_v52 = vpack.c.bf16 %v1563_v50, %v1562_v48  ;;  %v2849_v61 = vadd.f32 %v2040_v58, %v2039_v17  ;;  %v2042_v62 = vpop.f32.mrb[94].mxu0 }
 0x254   :  { %v2131_v63 = vpop.f32.mrb[111].mxu1  ;;  %v2043_v37 = vpop.f32.mrb[95].mxu0 }
 0x255   :  { %v1480_v51 = vadd.f32 %v2129_v46, %v2825_v54  ;;  %v2132_v2 = vadd.f32 %v2131_v63, %v2130_v59  ;;  %2233 = vmatprep.mubr.bf16.mxu0 %v1588_v52  ;;  %v2852_v3 = vadd.f32 %v2043_v37, %v2042_v62 }
 0x257   :  { %v1483_v45 = vadd.f32 %v2132_v2, %v2828_v60  ;;  %v1564_v4 = vmax.f32 %v1480_v51, 0.0 }
 0x259   :  { %v1565_v5 = vmax.f32 %v1483_v45, 0.0  ;;  %v2045_v7 = vpop.f32.mrb[96].mxu0  ;;  %v2133_v9 = vpop.f32.mrb[112].mxu1 }
 0x25a   :  { %v2046_v20 = vpop.f32.mrb[97].mxu0  ;;  %v2134_v55 = vpop.f32.mrb[113].mxu1 }
 0x25b   :  { %v2855_v11 = vadd.f32 %v2046_v20, %v2045_v7  ;;  %v2135_v12 = vadd.f32 %v2134_v55, %v2133_v9  ;;  %v2048_v57 = vpop.f32.mrb[98].mxu0  ;;  %v2136_v15 = vpop.f32.mrb[114].mxu1  ;;  %v1589_v16 = vpack.c.bf16 %v1565_v5, %v1564_v4 }
 0x25c   :  { %v2049_v18 = vpop.f32.mrb[99].mxu0  ;;  %v2137_v54 = vpop.f32.mrb[115].mxu1 }
 0x25d   :  { %v1488_v0 = vadd.f32 %v2135_v12, %v2831_v8  ;;  %v2858_v25 = vadd.f32 %v2049_v18, %v2048_v57  ;;  %v2138_v26 = vadd.f32 %v2137_v54, %v2136_v15  ;;  %2234 = vmatmul.mubr.bf16.gmra.mrb[124].mxu0 %v1589_v16 }
 0x25f   :  { %v1491_v60 = vadd.f32 %v2138_v26, %v2834_v49  ;;  %v1566_v27 = vmax.f32 %v1488_v0, 0.0 }
 0x261   :  { %v1567_v28 = vmax.f32 %v1491_v60, 0.0  ;;  %v2051_v30 = vpop.f32.mrb[100].mxu0  ;;  %v2139_v31 = vpop.f32.mrb[116].mxu1 }
 0x262   :  { %v2052_v14 = vpop.f32.mrb[101].mxu0  ;;  %v2140_v1 = vpop.f32.mrb[117].mxu1 }
 0x263   :  { %v2861_v32 = vadd.f32 %v2052_v14, %v2051_v30  ;;  %v2141_v47 = vadd.f32 %v2140_v1, %v2139_v31  ;;  %v2054_v6 = vpop.f32.mrb[102].mxu0  ;;  %v2142_v34 = vpop.f32.mrb[118].mxu1  ;;  %v1590_v35 = vpack.c.bf16 %v1567_v28, %v1566_v27 }
 0x264   :  { %v2055_v36 = vpop.f32.mrb[103].mxu0  ;;  %v2143_v8 = vpop.f32.mrb[119].mxu1 }
 0x265   :  { %v1496_v38 = vadd.f32 %v2141_v47, %v2837_v19  ;;  %v2864_v23 = vadd.f32 %v2055_v36, %v2054_v6  ;;  %v2144_v39 = vadd.f32 %v2143_v8, %v2142_v34  ;;  %2237 = vmatprep.mubr.bf16.mxu0 %v1590_v35 }
 0x267   :  { %v1499_v49 = vadd.f32 %v2144_v39, %v2840_v33  ;;  %v1568_v40 = vmax.f32 %v1496_v38, 0.0 }
 0x269   :  { %v1569_v41 = vmax.f32 %v1499_v49, 0.0  ;;  %v2057_v10 = vpop.f32.mrb[104].mxu0  ;;  %v2145_v21 = vpop.f32.mrb[120].mxu1 }
 0x26a   :  { %v2058_v24 = vpop.f32.mrb[105].mxu0  ;;  %v2146_v22 = vpop.f32.mrb[121].mxu1 }
 0x26b   :  { %v2059_v13 = vadd.f32 %v2058_v24, %v2057_v10  ;;  %v2147_v43 = vadd.f32 %v2146_v22, %v2145_v21  ;;  %v2060_v29 = vpop.f32.mrb[106].mxu0  ;;  %v2148_v48 = vpop.f32.mrb[122].mxu1  ;;  %v1591_v50 = vpack.c.bf16 %v1569_v41, %v1568_v40 }
 0x26c   :  { %v2061_v53 = vpop.f32.mrb[107].mxu0  ;;  %v2149_v17 = vpop.f32.mrb[123].mxu1 }
 0x26d   :  { %v1504_v19 = vadd.f32 %v2147_v43, %v2843_v42  ;;  %v2062_v56 = vadd.f32 %v2061_v53, %v2060_v29  ;;  %v2150_v58 = vadd.f32 %v2149_v17, %v2148_v48  ;;  %2238 = vmatmul.mubr.bf16.gmra.mrb[128].mxu0 %v1591_v50 }
 0x26f   :  { %v1507_v33 = vadd.f32 %v2150_v58, %v2846_v44  ;;  %v1570_v46 = vmax.f32 %v1504_v19, 0.0 }
 0x271   :  { %v1571_v59 = vmax.f32 %v1507_v33, 0.0  ;;  %v2063_v52 = vpop.f32.mrb[108].mxu0  ;;  %v2151_v62 = vpop.f32.mrb[124].mxu1 }
 0x272   :  { %v2064_v63 = vpop.f32.mrb[109].mxu0  ;;  %v2152_v37 = vpop.f32.mrb[125].mxu1 }
 0x273   :  { %v2065_v51 = vadd.f32 %v2064_v63, %v2063_v52  ;;  %v2153_v2 = vadd.f32 %v2152_v37, %v2151_v62  ;;  %v2066_v45 = vpop.f32.mrb[110].mxu0  ;;  %v2154_v4 = vpop.f32.mrb[126].mxu1  ;;  %v1592_v5 = vpack.c.bf16 %v1571_v59, %v1570_v46 }
 0x274   :  { %v2067_v7 = vpop.f32.mrb[111].mxu0  ;;  %v2155_v9 = vpop.f32.mrb[127].mxu1 }
 0x275   :  { %v1512_v42 = vadd.f32 %v2153_v2, %v2849_v61  ;;  %v2068_v20 = vadd.f32 %v2067_v7, %v2066_v45  ;;  %v2156_v55 = vadd.f32 %v2155_v9, %v2154_v4  ;;  %2241 = vmatprep.mubr.bf16.mxu0 %v1592_v5 }
 0x277   :  { %v1515_v44 = vadd.f32 %v2156_v55, %v2852_v3  ;;  %v1572_v12 = vmax.f32 %v1512_v42, 0.0 }
 0x279   :  { %v1573_v57 = vmax.f32 %v1515_v44, 0.0  ;;  %v2157_v15 = vpop.f32.mrb[128].mxu1 }
 0x27a   :  { %v2158_v16 = vpop.f32.mrb[129].mxu1 }
 0x27b   :  { %v2159_v18 = vadd.f32 %v2158_v16, %v2157_v15  ;;  %v2160_v54 = vpop.f32.mrb[130].mxu1  ;;  %v1593_v0 = vpack.c.bf16 %v1573_v57, %v1572_v12 }
 0x27c   :  { %v2161_v26 = vpop.f32.mrb[131].mxu1 }
 0x27d   :  { %v1520_v60 = vadd.f32 %v2159_v18, %v2855_v11  ;;  %v2162_v27 = vadd.f32 %v2161_v26, %v2160_v54  ;;  %2242 = vmatmul.mubr.bf16.gmra.mrb[132].mxu0 %v1593_v0 }
 0x27f   :  { %v1523_v28 = vadd.f32 %v2162_v27, %v2858_v25  ;;  %v1574_v61 = vmax.f32 %v1520_v60, 0.0 }
 0x281   :  { %v1575_v30 = vmax.f32 %v1523_v28, 0.0  ;;  %v2163_v31 = vpop.f32.mrb[132].mxu1 }
 0x282   :  { %v2164_v14 = vpop.f32.mrb[133].mxu1 }
 0x283   :  { %v2165_v1 = vadd.f32 %v2164_v14, %v2163_v31  ;;  %v2166_v3 = vpop.f32.mrb[134].mxu1  ;;  %v1594_v47 = vpack.c.bf16 %v1575_v30, %v1574_v61 }
 0x284   :  { %v2167_v6 = vpop.f32.mrb[135].mxu1 }
 0x285   :  { %v1528_v34 = vadd.f32 %v2165_v1, %v2861_v32  ;;  %v2168_v35 = vadd.f32 %v2167_v6, %v2166_v3  ;;  %2245 = vmatprep.mubr.bf16.mxu0 %v1594_v47 }
 0x287   :  { %v1531_v36 = vadd.f32 %v2168_v35, %v2864_v23  ;;  %v1576_v8 = vmax.f32 %v1528_v34, 0.0 }
 0x289   :  { %v1577_v11 = vmax.f32 %v1531_v36, 0.0  ;;  %v2169_v38 = vpop.f32.mrb[136].mxu1 }
 0x28a   :  { %v2170_v39 = vpop.f32.mrb[137].mxu1 }
 0x28b   :  { %v2171_v49 = vadd.f32 %v2170_v39, %v2169_v38  ;;  %v2172_v25 = vpop.f32.mrb[138].mxu1  ;;  %v1595_v40 = vpack.c.bf16 %v1577_v11, %v1576_v8 }
 0x28c   :  { %v2173_v41 = vpop.f32.mrb[139].mxu1 }
 0x28d   :  { %v1536_v10 = vadd.f32 %v2171_v49, %v2059_v13  ;;  %v2174_v21 = vadd.f32 %v2173_v41, %v2172_v25  ;;  %2246 = vmatmul.mubr.bf16.gmra.mrb[136].mxu0 %v1595_v40  ;;  %v2878_v13 = vld [vmem:[%s3013_s5] ss:$0 sm:$0xff] }
 0x28f   :  { %v1539_v24 = vadd.f32 %v2174_v21, %v2062_v56  ;;  %v1578_v22 = vmax.f32 %v1536_v10, 0.0 }
 0x291   :  { %v1579_v43 = vmax.f32 %v1539_v24, 0.0  ;;  %v2175_v29 = vpop.f32.mrb[140].mxu1 }
 0x292   :  { %v2176_v32 = vpop.f32.mrb[141].mxu1 }
 0x293   :  { %v2177_v48 = vadd.f32 %v2176_v32, %v2175_v29  ;;  %v2178_v50 = vpop.f32.mrb[142].mxu1  ;;  %v1596_v53 = vpack.c.bf16 %v1579_v43, %v1578_v22 }
 0x294   :  { %v2179_v23 = vpop.f32.mrb[143].mxu1 }
 0x295   :  { %v1544_v17 = vadd.f32 %v2177_v48, %v2065_v51  ;;  %v2180_v19 = vadd.f32 %v2179_v23, %v2178_v50  ;;  %2249 = vmatprep.mubr.bf16.mxu0 %v1596_v53 }
 0x297   :  { %v1547_v58 = vadd.f32 %v2180_v19, %v2068_v20  ;;  %v1580_v33 = vmax.f32 %v1544_v17, 0.0 }
 0x299   :  { %v1581_v46 = vmax.f32 %v1547_v58, 0.0 }
 0x29b   :  { %v1597_v59 = vpack.c.bf16 %v1581_v46, %v1580_v33 }
 0x29d   :  { %2250 = vmatmul.mubr.bf16.gmra.mrb[140].mxu0 %v1597_v59 }
 0x300   :  { %v2223_v56 = vpop.f32.mrb[112].mxu0 }
 0x301   :  { %v1712_v52 = vadd.f32 %v2223_v56, %v2878_v13  ;;  %v1703_v62 = vpop.f32.mrb[113].mxu0 }
 0x302   :  { %v1704_v63 = vadd.f32 %v2878_v13, %v1703_v62  ;;  %v2224_v37 = vpop.f32.mrb[114].mxu0 }
 0x303   :  { %1832 = vst [vmem:[%s3014_s6 + $0x10] sm:$0xff] %v1712_v52  ;;  %v1715_v51 = vadd.f32 %v2224_v37, %v2878_v13  ;;  %v1706_v2 = vpop.f32.mrb[115].mxu0 }
 0x304   :  { %1830 = vst [vmem:[%s3014_s6] sm:$0xff] %v1704_v63  ;;  %v1707_v45 = vadd.f32 %v2878_v13, %v1706_v2 }
 0x305   :  { %1833 = vst [vmem:[%s3014_s6 + $0x18] sm:$0xff] %v1715_v51 }
 0x306   :  { %1831 = vst [vmem:[%s3014_s6 + $0x8] sm:$0xff] %v1707_v45 }
 0x310   :  { %v2227_v4 = vpop.f32.mrb[116].mxu0 }
 0x311   :  { %v1728_v5 = vadd.f32 %v2227_v4, %v2878_v13  ;;  %v1719_v7 = vpop.f32.mrb[117].mxu0 }
 0x312   :  { %v1720_v9 = vadd.f32 %v2878_v13, %v1719_v7  ;;  %v2228_v42 = vpop.f32.mrb[118].mxu0 }
 0x313   :  { %1836 = vst [vmem:[%s3014_s6 + $0x30] sm:$0xff] %v1728_v5  ;;  %v1731_v20 = vadd.f32 %v2228_v42, %v2878_v13  ;;  %v1722_v55 = vpop.f32.mrb[119].mxu0 }
 0x314   :  { %1834 = vst [vmem:[%s3014_s6 + $0x20] sm:$0xff] %v1720_v9  ;;  %v1723_v44 = vadd.f32 %v2878_v13, %v1722_v55 }
 0x315   :  { %1837 = vst [vmem:[%s3014_s6 + $0x38] sm:$0xff] %v1731_v20 }
 0x316   :  { %1835 = vst [vmem:[%s3014_s6 + $0x28] sm:$0xff] %v1723_v44 }
 0x320   :  { %v2231_v12 = vpop.f32.mrb[120].mxu0 }
 0x321   :  { %v1744_v57 = vadd.f32 %v2231_v12, %v2878_v13  ;;  %v1735_v15 = vpop.f32.mrb[121].mxu0 }
 0x322   :  { %v1736_v16 = vadd.f32 %v2878_v13, %v1735_v15  ;;  %v2232_v18 = vpop.f32.mrb[122].mxu0 }
 0x323   :  { %1840 = vst [vmem:[%s3014_s6 + $0x50] sm:$0xff] %v1744_v57  ;;  %v1747_v54 = vadd.f32 %v2232_v18, %v2878_v13  ;;  %v1738_v0 = vpop.f32.mrb[123].mxu0 }
 0x324   :  { %1838 = vst [vmem:[%s3014_s6 + $0x40] sm:$0xff] %v1736_v16  ;;  %v1739_v26 = vadd.f32 %v2878_v13, %v1738_v0 }
 0x325   :  { %1841 = vst [vmem:[%s3014_s6 + $0x58] sm:$0xff] %v1747_v54 }
 0x326   :  { %1839 = vst [vmem:[%s3014_s6 + $0x48] sm:$0xff] %v1739_v26 }
 0x330   :  { %v2235_v60 = vpop.f32.mrb[124].mxu0 }
 0x331   :  { %v1760_v27 = vadd.f32 %v2235_v60, %v2878_v13  ;;  %v1751_v28 = vpop.f32.mrb[125].mxu0 }
 0x332   :  { %v1752_v61 = vadd.f32 %v2878_v13, %v1751_v28  ;;  %v2236_v30 = vpop.f32.mrb[126].mxu0 }
 0x333   :  { %1844 = vst [vmem:[%s3014_s6 + $0x70] sm:$0xff] %v1760_v27  ;;  %v1763_v31 = vadd.f32 %v2236_v30, %v2878_v13  ;;  %v1754_v14 = vpop.f32.mrb[127].mxu0 }
 0x334   :  { %1842 = vst [vmem:[%s3014_s6 + $0x60] sm:$0xff] %v1752_v61  ;;  %v1755_v1 = vadd.f32 %v2878_v13, %v1754_v14 }
 0x335   :  { %1845 = vst [vmem:[%s3014_s6 + $0x78] sm:$0xff] %v1763_v31 }
 0x336   :  { %1843 = vst [vmem:[%s3014_s6 + $0x68] sm:$0xff] %v1755_v1 }
 0x340   :  { %v2239_v3 = vpop.f32.mrb[128].mxu0 }
 0x341   :  { %v1776_v47 = vadd.f32 %v2239_v3, %v2878_v13  ;;  %v1767_v6 = vpop.f32.mrb[129].mxu0 }
 0x342   :  { %v1768_v34 = vadd.f32 %v2878_v13, %v1767_v6  ;;  %v2240_v35 = vpop.f32.mrb[130].mxu0 }
 0x343   :  { %1848 = vst [vmem:[%s3014_s6 + $0x90] sm:$0xff] %v1776_v47  ;;  %v1779_v36 = vadd.f32 %v2240_v35, %v2878_v13  ;;  %v1770_v8 = vpop.f32.mrb[131].mxu0 }
 0x344   :  { %1846 = vst [vmem:[%s3014_s6 + $0x80] sm:$0xff] %v1768_v34  ;;  %v1771_v11 = vadd.f32 %v2878_v13, %v1770_v8 }
 0x345   :  { %1849 = vst [vmem:[%s3014_s6 + $0x98] sm:$0xff] %v1779_v36 }
 0x346   :  { %1847 = vst [vmem:[%s3014_s6 + $0x88] sm:$0xff] %v1771_v11 }
 0x350   :  { %v2243_v38 = vpop.f32.mrb[132].mxu0 }
 0x351   :  { %v1792_v39 = vadd.f32 %v2243_v38, %v2878_v13  ;;  %v1783_v49 = vpop.f32.mrb[133].mxu0 }
 0x352   :  { %v1784_v25 = vadd.f32 %v2878_v13, %v1783_v49  ;;  %v2244_v40 = vpop.f32.mrb[134].mxu0 }
 0x353   :  { %1852 = vst [vmem:[%s3014_s6 + $0xb0] sm:$0xff] %v1792_v39  ;;  %v1795_v41 = vadd.f32 %v2244_v40, %v2878_v13  ;;  %v1786_v10 = vpop.f32.mrb[135].mxu0 }
 0x354   :  { %1850 = vst [vmem:[%s3014_s6 + $0xa0] sm:$0xff] %v1784_v25  ;;  %v1787_v21 = vadd.f32 %v2878_v13, %v1786_v10 }
 0x355   :  { %1853 = vst [vmem:[%s3014_s6 + $0xb8] sm:$0xff] %v1795_v41 }
 0x356   :  { %1851 = vst [vmem:[%s3014_s6 + $0xa8] sm:$0xff] %v1787_v21 }
 0x360   :  { %v2247_v24 = vpop.f32.mrb[136].mxu0 }
 0x361   :  { %v1808_v22 = vadd.f32 %v2247_v24, %v2878_v13  ;;  %v1799_v43 = vpop.f32.mrb[137].mxu0 }
 0x362   :  { %v1800_v29 = vadd.f32 %v2878_v13, %v1799_v43  ;;  %v2248_v32 = vpop.f32.mrb[138].mxu0 }
 0x363   :  { %1856 = vst [vmem:[%s3014_s6 + $0xd0] sm:$0xff] %v1808_v22  ;;  %v1811_v48 = vadd.f32 %v2248_v32, %v2878_v13  ;;  %v1802_v50 = vpop.f32.mrb[139].mxu0 }
 0x364   :  { %1854 = vst [vmem:[%s3014_s6 + $0xc0] sm:$0xff] %v1800_v29  ;;  %v1803_v53 = vadd.f32 %v2878_v13, %v1802_v50 }
 0x365   :  { %1857 = vst [vmem:[%s3014_s6 + $0xd8] sm:$0xff] %v1811_v48 }
 0x366   :  { %1855 = vst [vmem:[%s3014_s6 + $0xc8] sm:$0xff] %v1803_v53 }
 0x370   :  { %v2251_v23 = vpop.f32.mrb[140].mxu0 }
 0x371   :  { %v1824_v17 = vadd.f32 %v2251_v23, %v2878_v13  ;;  %v1815_v19 = vpop.f32.mrb[141].mxu0 }
 0x372   :  { %v1816_v58 = vadd.f32 %v2878_v13, %v1815_v19  ;;  %v2252_v33 = vpop.f32.mrb[142].mxu0 }
 0x373   :  { %1860 = vst [vmem:[%s3014_s6 + $0xf0] sm:$0xff] %v1824_v17  ;;  %v1827_v46 = vadd.f32 %v2252_v33, %v2878_v13  ;;  %v1818_v59 = vpop.f32.mrb[143].mxu0 }
 0x374   :  { %1858 = vst [vmem:[%s3014_s6 + $0xe0] sm:$0xff] %v1816_v58  ;;  %v1819_v56 = vadd.f32 %v2878_v13, %v1818_v59 }
 0x375   :  { %1861 = vst [vmem:[%s3014_s6 + $0xf8] sm:$0xff] %v1827_v46 }
 0x376   :  { %1859 = vst [vmem:[%s3014_s6 + $0xe8] sm:$0xff] %v1819_v56 }
 0x377   :  { %1866 = vsyncpa [#allocation3], 1 }
 0x378   :  { %1867 = vsyncpa [#allocation5], 1 }

</bundles_post_ra>
